<compile_context>
chip_gen: v6e
topology: v6e:2x2x1
jax: 0.10.0
libtpu: 0.0.40
codegen_flags: <defaults>
</compile_context>

<pallas_src>
import functools
import math

import numpy as np
import jax
import jax.numpy as jnp
from jax import lax
from jax.experimental import pallas as pl
from jax.experimental.pallas import tpu as pltpu


def _mha_flash_kernel(q_ref, k_ref, v_ref, wq_ref, wk_ref, wv_ref, wo_ref,
                      o_ref, qh_sc, m_sc, l_sc, acc_sc, *cache_refs,
                      matmul_dtype, approx_recip, cache_kv):
    """One (batch, q-tile, kv-tile) grid step.

    q_ref/k_ref/v_ref : (1, tq|tk, D)   input tiles
    wq/wk/wv_ref      : (H, D, dh)      per-head input projections (x @ W layout)
    wo_ref            : (H, dh, D)      per-head output projection
    o_ref             : (1, tq, D)      output tile, resident across the ki axis
    qh_sc             : (H, tq, dh)     projected + scaled Q (set at ki == 0)
    m_sc / l_sc       : (H, tq, 1) f32  online-softmax running max / sum
    acc_sc            : (H, tq, dh) f32 un-normalized output accumulator
    cache_refs        : optional (k_cache, v_cache) of shape (nk, H, tk, dh)
    """
    H, D, dh = wq_ref.shape
    tq = q_ref.shape[1]
    tk = k_ref.shape[1]
    qi = pl.program_id(1)
    ki = pl.program_id(2)
    scale = 1.0 / math.sqrt(dh)

    # (H, m, K) @ (H, K, n) -> (H, m, n)   [batch over heads]
    dn_proj = (((2,), (1,)), ((0,), (0,)))
    # (H, tq, dh) . (H, tk, dh) contracting last dims -> (H, tq, tk)
    dn_qkT = (((2,), (2,)), ((0,), (0,)))

    def project_kv():
        k = k_ref[0].astype(matmul_dtype)                           # (tk, D)
        v = v_ref[0].astype(matmul_dtype)
        kb = jnp.broadcast_to(k[None, :, :], (H, tk, D))
        vb = jnp.broadcast_to(v[None, :, :], (H, tk, D))
        kh = lax.dot_general(kb, wk_ref[...], dn_proj,
                             preferred_element_type=jnp.float32)    # (H, tk, dh)
        vh = lax.dot_general(vb, wv_ref[...], dn_proj,
                             preferred_element_type=jnp.float32)
        return kh.astype(matmul_dtype), vh.astype(matmul_dtype)

    @pl.when(ki == 0)
    def _init():
        q = q_ref[0].astype(matmul_dtype)                           # (tq, D)
        qb = jnp.broadcast_to(q[None, :, :], (H, tq, D))
        qh = lax.dot_general(qb, wq_ref[...], dn_proj,
                             preferred_element_type=jnp.float32)    # (H, tq, dh)
        qh_sc[...] = (qh * scale).astype(qh_sc.dtype)   # fold 1/sqrt(dh) into Q
        m_sc[...] = jnp.full(m_sc.shape, -jnp.inf, dtype=m_sc.dtype)
        l_sc[...] = jnp.zeros(l_sc.shape, dtype=l_sc.dtype)
        acc_sc[...] = jnp.zeros(acc_sc.shape, dtype=acc_sc.dtype)

    if cache_kv:
        k_cache, v_cache = cache_refs

        # Fill the projected-K/V cache once per (batch, kv-tile) on the first
        # q-tile pass; every later q tile reuses it (no re-projection).
        @pl.when(qi == 0)
        def _fill_cache():
            kh_new, vh_new = project_kv()
            k_cache[ki] = kh_new
            v_cache[ki] = vh_new

        kh = k_cache[ki]
        vh = v_cache[ki]
    else:
        kh, vh = project_kv()

    # Scores for all heads at once: (H, tq, tk); transposed-RHS contraction is
    # expressed via dimension_numbers (no explicit transpose).
    s = lax.dot_general(qh_sc[...], kh, dn_qkT,
                        preferred_element_type=jnp.float32)

    # Online softmax; elementwise math stays f32.
    m_prev = m_sc[...]
    m_new = jnp.maximum(m_prev, jnp.max(s, axis=-1, keepdims=True))
    alpha = jnp.exp(m_prev - m_new)
    p = jnp.exp(s - m_new)
    l_sc[...] = alpha * l_sc[...] + jnp.sum(p, axis=-1, keepdims=True)
    pv = lax.dot_general(p.astype(matmul_dtype), vh, dn_proj,
                         preferred_element_type=jnp.float32)
    acc_sc[...] = alpha * acc_sc[...] + pv
    m_sc[...] = m_new

    @pl.when(ki == pl.num_programs(2) - 1)
    def _finalize():
        inv_l = pl.reciprocal(l_sc[...], approx=approx_recip)
        attn = acc_sc[...] * inv_l                                   # (H, tq, dh)
        # Output projection without concatenate: out = sum_h attn_h @ Wo_h.
        outs = lax.dot_general(attn.astype(matmul_dtype), wo_ref[...],
                               dn_proj, preferred_element_type=jnp.float32)
        o_ref[0] = jnp.sum(outs, axis=0).astype(o_ref.dtype)        # (tq, D)


def _seq_tile(S, target):
    """Largest tile <= target that divides S (full S if it is small)."""
    if S <= target:
        return S
    t = target
    while S % t:
        t -= 1
    return t


def _weight_spec(shape, single_buffer):
    index_map = lambda b, qi, ki: (0,) * len(shape)
    if single_buffer and hasattr(pl, "Buffered"):
        try:
            # Constant block across the whole grid -> no need to double-buffer.
            return pl.BlockSpec(shape, index_map, pipeline_mode=pl.Buffered(1))
        except TypeError:   # BlockSpec without pipeline_mode support
            pass
    return pl.BlockSpec(shape, index_map)


def multi_head_attention(Q, K, V, Wq, Wk, Wv, Wo, head_num, *,
                         matmul_dtype=jnp.bfloat16,
                         q_tile=128, kv_tile=128,
                         cache_kv="auto",
                         single_buffer_weights=True):
    """Q, K, V: (B, S, D) float32.  Wq/Wk/Wv/Wo: PyTorch nn.Linear (out, in)."""
    B, S, D = Q.shape
    if D % head_num:
        raise ValueError(f"dim={D} must be divisible by head_num={head_num}")
    H = head_num
    dh = D // H

    tq = _seq_tile(S, q_tile)
    tk = _seq_tile(S, kv_tile)
    nq, nk = S // tq, S // tk

    mm_bytes = np.dtype(matmul_dtype).itemsize
    dh_pad = ((dh + 127) // 128) * 128          # lane padding of the head dim
    d_pad = ((D + 127) // 128) * 128
    cache_bytes = 2 * nk * H * tk * dh_pad * mm_bytes   # padded K/V cache size
    if cache_kv == "auto":
        cache_kv = (nq > 1) and (cache_bytes <= (16 << 20))
    cache_kv = bool(cache_kv)

    # Wrapper-side weight preprocessing (plain JAX glue):
    #  - transpose to (in, out) so the kernel computes x @ W,
    #  - split the head dim out so the kernel batches heads in dot_general,
    #  - cast to the MXU operand dtype (halves weight DMA in bf16 mode).
    wq_h = Wq.T.reshape(D, H, dh).transpose(1, 0, 2).astype(matmul_dtype)  # (H, D, dh)
    wk_h = Wk.T.reshape(D, H, dh).transpose(1, 0, 2).astype(matmul_dtype)
    wv_h = Wv.T.reshape(D, H, dh).transpose(1, 0, 2).astype(matmul_dtype)
    wo_h = Wo.T.reshape(H, dh, D).astype(matmul_dtype)                     # (H, dh, D)
    Qc, Kc, Vc = (x.astype(matmul_dtype) for x in (Q, K, V))

    q_spec = pl.BlockSpec((1, tq, D), lambda b, qi, ki: (b, qi, 0))
    if cache_kv:
        # After the first q-tile pass the K/V inputs are never read again; pin
        # the block index so the pipeline stops streaming them from HBM.
        kv_index = lambda b, qi, ki: (b, jnp.where(qi == 0, ki, 0), 0)
    else:
        kv_index = lambda b, qi, ki: (b, ki, 0)
    kv_spec = pl.BlockSpec((1, tk, D), kv_index)
    o_spec = pl.BlockSpec((1, tq, D), lambda b, qi, ki: (b, qi, 0))
    wi_spec = _weight_spec((H, D, dh), single_buffer_weights)
    wo_spec = _weight_spec((H, dh, D), single_buffer_weights)

    scratch_shapes = [
        pltpu.VMEM((H, tq, dh), matmul_dtype),   # projected + scaled Q
        pltpu.VMEM((H, tq, 1), jnp.float32),     # running max
        pltpu.VMEM((H, tq, 1), jnp.float32),     # running sum
        pltpu.VMEM((H, tq, dh), jnp.float32),    # output accumulator
    ]
    if cache_kv:
        scratch_shapes += [pltpu.VMEM((nk, H, tk, dh), matmul_dtype),   # K cache
                           pltpu.VMEM((nk, H, tk, dh), matmul_dtype)]   # V cache

    # Explicit VMEM budget: double-buffered activation tiles + weights +
    # scratch (lane-padded) + in-kernel intermediates, with headroom; never
    # below the default so tiny shapes keep compiling unchanged.
    wbuf = 1 if single_buffer_weights else 2
    est = (2 * tq * d_pad * mm_bytes                 # Q block (double-buffered)
           + 2 * 2 * tk * d_pad * mm_bytes           # K, V blocks
           + 2 * tq * d_pad * 4                      # output block (f32)
           + wbuf * 3 * H * D * dh_pad * mm_bytes    # Wq/Wk/Wv blocks
           + wbuf * H * max(dh, 8) * d_pad * mm_bytes  # Wo block
           + H * tq * dh_pad * (mm_bytes + 4)        # qh + acc scratch
           + 2 * H * tq * 128 * 4                    # m / l scratch
           + 3 * H * max(tq, tk) * d_pad * mm_bytes  # broadcast head copies
           + 2 * H * tq * tk * 4                     # scores / probs
           + H * tq * d_pad * 4                      # per-head out partials
           + (cache_bytes if cache_kv else 0))       # projected K/V cache
    vmem_limit = min(max(int(est * 1.25) + (2 << 20), 32 << 20), 100 << 20)

    if cache_kv:
        # Cache fill requires every q tile of a batch to run on the same core
        # starting at qi == 0 -> only the batch axis is megacore-parallel.
        dims = ("parallel", "arbitrary", "arbitrary")
    else:
        dims = ("parallel", "parallel", "arbitrary")

    kernel = functools.partial(
        _mha_flash_kernel,
        matmul_dtype=matmul_dtype,
        approx_recip=(np.dtype(matmul_dtype) != np.dtype(np.float32)),
        cache_kv=cache_kv,
    )

    return pl.pallas_call(
        kernel,
        out_shape=jax.ShapeDtypeStruct((B, S, D), jnp.float32),
        grid_spec=pltpu.PrefetchScalarGridSpec(
            num_scalar_prefetch=0,
            grid=(B, nq, nk),
            in_specs=[q_spec, kv_spec, kv_spec,
                      wi_spec, wi_spec, wi_spec, wo_spec],
            out_specs=o_spec,
            scratch_shapes=scratch_shapes,
        ),
        compiler_params=pltpu.CompilerParams(
            dimension_semantics=dims,
            vmem_limit_bytes=vmem_limit,
        ),
    )(Qc, Kc, Vc, wq_h, wk_h, wv_h, wo_h)


def reference(Q, K, V, Wq, Wk, Wv, Wo, head_num):
    """Pure-JAX reference mirroring the PyTorch forward (eval mode, mask=None)."""
    B, S, D = Q.shape
    dh = D // head_num
    qp = Q @ Wq.T
    kp = K @ Wk.T
    vp = V @ Wv.T

    def split(x):  # (B, S, D) -> (B, H, S, dh)
        return jnp.transpose(x.reshape(B, S, head_num, dh), (0, 2, 1, 3))

    q, k, v = split(qp), split(kp), split(vp)
    qk = jnp.einsum("bhqd,bhkd->bhqk", q, k) / math.sqrt(dh)
    p = jax.nn.softmax(qk, axis=3)
    o = jnp.einsum("bhqk,bhkd->bhqd", p, v)
    o = jnp.transpose(o, (0, 2, 1, 3)).reshape(B, S, D)
    return o @ Wo.T


if __name__ == "__main__":
    def make_case(key, B, S, D, H):
        kq, kk, kv, kwq, kwk, kwv, kwo = jax.random.split(key, 7)
        bound = 1.0 / math.sqrt(D)
        Q = jax.random.normal(kq, (B, S, D), dtype=jnp.float32)
        K = jax.random.normal(kk, (B, S, D), dtype=jnp.float32)
        V = jax.random.normal(kv, (B, S, D), dtype=jnp.float32)
        Wq = jax.random.uniform(kwq, (D, D), jnp.float32, -bound, bound)
        Wk = jax.random.uniform(kwk, (D, D), jnp.float32, -bound, bound)
        Wv = jax.random.uniform(kwv, (D, D), jnp.float32, -bound, bound)
        Wo = jax.random.uniform(kwo, (D, D), jnp.float32, -bound, bound)
        return (Q, K, V, Wq, Wk, Wv, Wo, H)

    def run_and_check(case, matmul_dtype, single_buffer, atol, rtol,
                      cache_kv="auto"):
        Q, K, V, Wq, Wk, Wv, Wo, H = case
        out = multi_head_attention(Q, K, V, Wq, Wk, Wv, Wo, H,
                                   matmul_dtype=matmul_dtype,
                                   cache_kv=cache_kv,
                                   single_buffer_weights=single_buffer)
        out = jax.block_until_ready(out)
        ref = reference(Q, K, V, Wq, Wk, Wv, Wo, H)
        assert out.shape == ref.shape
        if not jnp.allclose(out, ref, atol=atol, rtol=rtol):
            err = float(jnp.max(jnp.abs(out - ref)))
            raise AssertionError(f"mismatch vs reference (max abs err={err})")
        return out

    key = jax.random.PRNGKey(0)
    k_small, k_large = jax.random.split(key)

    # Case 1: module-scale shapes (single tile per batch, grid = (2, 1, 1)).
    case_small = make_case(k_small, 2, 8, 32, 4)
    # Case 2: exercises the multi-tile flash path (grid = (2, 2, 2)).
    case_large = make_case(k_large, 2, 256, 128, 4)

    # f32 MXU operands: tight check.  If this JAX build rejects single-buffered
    # (pl.Buffered(1)) weight blocks, fall back to default double-buffering.
    single_buffer = True
    try:
        run_and_check(case_small, jnp.float32, single_buffer, 1e-3, 1e-3)
    except Exception:
        single_buffer = False
        run_and_check(case_small, jnp.float32, single_buffer, 1e-3, 1e-3)

    # Multi-tile flash path with the projected-K/V VMEM cache (auto-enabled).
    run_and_check(case_large, jnp.float32, single_buffer, 1e-3, 1e-3)
    # Same shapes with the cache disabled (per-step K/V projection path).
    run_and_check(case_large, jnp.float32, single_buffer, 1e-3, 1e-3,
                  cache_kv=False)

    # bf16 MXU operands (v6e/v7x fast path): f32 softmax + f32 accumulation,
    # checked against the f32 reference with a correspondingly looser tolerance.
    run_and_check(case_small, jnp.bfloat16, single_buffer, 5e-2, 5e-2)
    run_and_check(case_large, jnp.bfloat16, single_buffer, 5e-2, 5e-2)

    print("KERNEL_OK")
</pallas_src>

<mosaic_0001>
module attributes {stable_mosaic.version = 11 : i64} {
  func.func @_mha_flash_kernel(%arg0: i32, %arg1: i32, %arg2: i32, %arg3: memref<1x8x32xf32, #tpu.memory_space<vmem>>, %arg4: memref<1x8x32xf32, #tpu.memory_space<vmem>>, %arg5: memref<1x8x32xf32, #tpu.memory_space<vmem>>, %arg6: memref<4x32x8xf32, #tpu.memory_space<vmem>>, %arg7: memref<4x32x8xf32, #tpu.memory_space<vmem>>, %arg8: memref<4x32x8xf32, #tpu.memory_space<vmem>>, %arg9: memref<4x8x32xf32, #tpu.memory_space<vmem>>, %arg10: memref<1x8x32xf32, #tpu.memory_space<vmem>>, %arg11: memref<4x8x8xf32, #tpu.memory_space<vmem>>, %arg12: memref<4x8x1xf32, #tpu.memory_space<vmem>>, %arg13: memref<4x8x1xf32, #tpu.memory_space<vmem>>, %arg14: memref<4x8x8xf32, #tpu.memory_space<vmem>>) attributes {dimension_semantics = [#tpu.dimension_semantics<parallel>, #tpu.dimension_semantics<parallel>, #tpu.dimension_semantics<arbitrary>], iteration_bounds = array<i64: 2, 1, 1>, scalar_prefetch = 0 : i64, scratch_operands = 4 : i64, tpu.core_type = #tpu.core_type<tc>, window_params = [{transform_indices = @transform_0, window_bounds = array<i64: 1, 8, 32>}, {transform_indices = @transform_1, window_bounds = array<i64: 1, 8, 32>}, {transform_indices = @transform_2, window_bounds = array<i64: 1, 8, 32>}, {pipeline_mode = #tpu.pipeline_mode<synchronous>, transform_indices = @transform_3, window_bounds = array<i64: 4, 32, 8>}, {pipeline_mode = #tpu.pipeline_mode<synchronous>, transform_indices = @transform_4, window_bounds = array<i64: 4, 32, 8>}, {pipeline_mode = #tpu.pipeline_mode<synchronous>, transform_indices = @transform_5, window_bounds = array<i64: 4, 32, 8>}, {pipeline_mode = #tpu.pipeline_mode<synchronous>, transform_indices = @transform_6, window_bounds = array<i64: 4, 8, 32>}, {transform_indices = @transform_7, window_bounds = array<i64: 1, 8, 32>}]} {
    %c0_i32 = arith.constant 0 : i32
    %0 = arith.cmpi eq, %arg2, %c0_i32 : i32
    %1 = arith.extui %0 : i1 to i32
    %c0_i32_0 = arith.constant 0 : i32
    %2 = arith.cmpi ne, %1, %c0_i32_0 : i32
    scf.if %2 {
      %c0_40 = arith.constant 0 : index
      %c0_41 = arith.constant 0 : index
      %c0_42 = arith.constant 0 : index
      %44 = vector.load %arg3[%c0_40, %c0_41, %c0_42] : memref<1x8x32xf32, #tpu.memory_space<vmem>>, vector<1x8x32xf32>
      %45 = vector.shape_cast %44 : vector<1x8x32xf32> to vector<8x32xf32>
      %46 = vector.shape_cast %45 : vector<8x32xf32> to vector<1x8x32xf32>
      %47 = vector.shape_cast %46 : vector<1x8x32xf32> to vector<1x8x32xf32>
      %48 = vector.broadcast %47 : vector<1x8x32xf32> to vector<4x8x32xf32>
      %c0_43 = arith.constant 0 : index
      %c0_44 = arith.constant 0 : index
      %c0_45 = arith.constant 0 : index
      %49 = vector.load %arg6[%c0_43, %c0_44, %c0_45] : memref<4x32x8xf32, #tpu.memory_space<vmem>>, vector<4x32x8xf32>
      %cst_46 = arith.constant dense<0.000000e+00> : vector<4x8x8xf32>
      %50 = tpu.matmul %48, %49, %cst_46 {dimension_numbers = #tpu.dot_dimension_numbers<[2], [1], [1], [2], [0, 0, 0, 1, 1, 2], [0], [0]>} : vector<4x8x32xf32>, vector<4x32x8xf32>, vector<4x8x8xf32> -> vector<4x8x8xf32>
      %cst_47 = arith.constant 0.353553385 : f32
      %51 = vector.broadcast %cst_47 : f32 to vector<4x8x8xf32>
      %52 = arith.mulf %50, %51 : vector<4x8x8xf32>
      %c0_48 = arith.constant 0 : index
      %c0_49 = arith.constant 0 : index
      %c0_50 = arith.constant 0 : index
      %53 = vector.load %arg11[%c0_48, %c0_49, %c0_50] : memref<4x8x8xf32, #tpu.memory_space<vmem>>, vector<4x8x8xf32>
      tpu.vector_store %arg11[%c0_48, %c0_49, %c0_50], %52 {strides = array<i32>} : memref<4x8x8xf32, #tpu.memory_space<vmem>>, vector<4x8x8xf32>,
      %cst_51 = arith.constant 0xFF800000 : f32
      %54 = vector.broadcast %cst_51 : f32 to vector<4x8x1xf32>
      %c0_52 = arith.constant 0 : index
      %c0_53 = arith.constant 0 : index
      %c0_54 = arith.constant 0 : index
      %55 = vector.load %arg12[%c0_52, %c0_53, %c0_54] : memref<4x8x1xf32, #tpu.memory_space<vmem>>, vector<4x8x1xf32>
      tpu.vector_store %arg12[%c0_52, %c0_53, %c0_54], %54 {strides = array<i32>} : memref<4x8x1xf32, #tpu.memory_space<vmem>>, vector<4x8x1xf32>,
      %cst_55 = arith.constant 0.000000e+00 : f32
      %56 = vector.broadcast %cst_55 : f32 to vector<4x8x1xf32>
      %c0_56 = arith.constant 0 : index
      %c0_57 = arith.constant 0 : index
      %c0_58 = arith.constant 0 : index
      %57 = vector.load %arg13[%c0_56, %c0_57, %c0_58] : memref<4x8x1xf32, #tpu.memory_space<vmem>>, vector<4x8x1xf32>
      tpu.vector_store %arg13[%c0_56, %c0_57, %c0_58], %56 {strides = array<i32>} : memref<4x8x1xf32, #tpu.memory_space<vmem>>, vector<4x8x1xf32>,
      %cst_59 = arith.constant 0.000000e+00 : f32
      %58 = vector.broadcast %cst_59 : f32 to vector<4x8x8xf32>
      %c0_60 = arith.constant 0 : index
      %c0_61 = arith.constant 0 : index
      %c0_62 = arith.constant 0 : index
      %59 = vector.load %arg14[%c0_60, %c0_61, %c0_62] : memref<4x8x8xf32, #tpu.memory_space<vmem>>, vector<4x8x8xf32>
      tpu.vector_store %arg14[%c0_60, %c0_61, %c0_62], %58 {strides = array<i32>} : memref<4x8x8xf32, #tpu.memory_space<vmem>>, vector<4x8x8xf32>,
    } else {
    }
    %c0 = arith.constant 0 : index
    %c0_1 = arith.constant 0 : index
    %c0_2 = arith.constant 0 : index
    %3 = vector.load %arg4[%c0, %c0_1, %c0_2] : memref<1x8x32xf32, #tpu.memory_space<vmem>>, vector<1x8x32xf32>
    %4 = vector.shape_cast %3 : vector<1x8x32xf32> to vector<8x32xf32>
    %c0_3 = arith.constant 0 : index
    %c0_4 = arith.constant 0 : index
    %c0_5 = arith.constant 0 : index
    %5 = vector.load %arg5[%c0_3, %c0_4, %c0_5] : memref<1x8x32xf32, #tpu.memory_space<vmem>>, vector<1x8x32xf32>
    %6 = vector.shape_cast %5 : vector<1x8x32xf32> to vector<8x32xf32>
    %7 = vector.shape_cast %4 : vector<8x32xf32> to vector<1x8x32xf32>
    %8 = vector.shape_cast %7 : vector<1x8x32xf32> to vector<1x8x32xf32>
    %9 = vector.broadcast %8 : vector<1x8x32xf32> to vector<4x8x32xf32>
    %10 = vector.shape_cast %6 : vector<8x32xf32> to vector<1x8x32xf32>
    %11 = vector.shape_cast %10 : vector<1x8x32xf32> to vector<1x8x32xf32>
    %12 = vector.broadcast %11 : vector<1x8x32xf32> to vector<4x8x32xf32>
    %c0_6 = arith.constant 0 : index
    %c0_7 = arith.constant 0 : index
    %c0_8 = arith.constant 0 : index
    %13 = vector.load %arg7[%c0_6, %c0_7, %c0_8] : memref<4x32x8xf32, #tpu.memory_space<vmem>>, vector<4x32x8xf32>
    %cst = arith.constant dense<0.000000e+00> : vector<4x8x8xf32>
    %14 = tpu.matmul %9, %13, %cst {dimension_numbers = #tpu.dot_dimension_numbers<[2], [1], [1], [2], [0, 0, 0, 1, 1, 2], [0], [0]>} : vector<4x8x32xf32>, vector<4x32x8xf32>, vector<4x8x8xf32> -> vector<4x8x8xf32>
    %c0_9 = arith.constant 0 : index
    %c0_10 = arith.constant 0 : index
    %c0_11 = arith.constant 0 : index
    %15 = vector.load %arg8[%c0_9, %c0_10, %c0_11] : memref<4x32x8xf32, #tpu.memory_space<vmem>>, vector<4x32x8xf32>
    %cst_12 = arith.constant dense<0.000000e+00> : vector<4x8x8xf32>
    %16 = tpu.matmul %12, %15, %cst_12 {dimension_numbers = #tpu.dot_dimension_numbers<[2], [1], [1], [2], [0, 0, 0, 1, 1, 2], [0], [0]>} : vector<4x8x32xf32>, vector<4x32x8xf32>, vector<4x8x8xf32> -> vector<4x8x8xf32>
    %c0_13 = arith.constant 0 : index
    %c0_14 = arith.constant 0 : index
    %c0_15 = arith.constant 0 : index
    %17 = vector.load %arg11[%c0_13, %c0_14, %c0_15] : memref<4x8x8xf32, #tpu.memory_space<vmem>>, vector<4x8x8xf32>
    %cst_16 = arith.constant dense<0.000000e+00> : vector<4x8x8xf32>
    %18 = tpu.matmul %17, %14, %cst_16 {dimension_numbers = #tpu.dot_dimension_numbers<[2], [2], [1], [1], [0, 0, 0, 1, 1, 1], [0], [0]>} : vector<4x8x8xf32>, vector<4x8x8xf32>, vector<4x8x8xf32> -> vector<4x8x8xf32>
    %c0_17 = arith.constant 0 : index
    %c0_18 = arith.constant 0 : index
    %c0_19 = arith.constant 0 : index
    %19 = vector.load %arg12[%c0_17, %c0_18, %c0_19] : memref<4x8x1xf32, #tpu.memory_space<vmem>>, vector<4x8x1xf32>
    %cst_20 = arith.constant dense<0xFF800000> : vector<4x8xf32>
    %20 = vector.multi_reduction <maximumf>, %18, %cst_20 [2] : vector<4x8x8xf32> to vector<4x8xf32>
    %21 = vector.shape_cast %20 : vector<4x8xf32> to vector<4x8x1xf32>
    %22 = arith.maximumf %19, %21 : vector<4x8x1xf32>
    %23 = arith.subf %19, %22 : vector<4x8x1xf32>
    %24 = math.exp %23 : vector<4x8x1xf32>
    %25 = vector.broadcast %22 : vector<4x8x1xf32> to vector<4x8x8xf32>
    %26 = arith.subf %18, %25 : vector<4x8x8xf32>
    %27 = math.exp %26 : vector<4x8x8xf32>
    %c0_21 = arith.constant 0 : index
    %c0_22 = arith.constant 0 : index
    %c0_23 = arith.constant 0 : index
    %28 = vector.load %arg13[%c0_21, %c0_22, %c0_23] : memref<4x8x1xf32, #tpu.memory_space<vmem>>, vector<4x8x1xf32>
    %29 = arith.mulf %24, %28 : vector<4x8x1xf32>
    %cst_24 = arith.constant dense<0.000000e+00> : vector<4x8xf32>
    %30 = vector.multi_reduction <add>, %27, %cst_24 [2] : vector<4x8x8xf32> to vector<4x8xf32>
    %31 = vector.shape_cast %30 : vector<4x8xf32> to vector<4x8x1xf32>
    %32 = arith.addf %29, %31 : vector<4x8x1xf32>
    %c0_25 = arith.constant 0 : index
    %c0_26 = arith.constant 0 : index
    %c0_27 = arith.constant 0 : index
    %33 = vector.load %arg13[%c0_25, %c0_26, %c0_27] : memref<4x8x1xf32, #tpu.memory_space<vmem>>, vector<4x8x1xf32>
    tpu.vector_store %arg13[%c0_25, %c0_26, %c0_27], %32 {strides = array<i32>} : memref<4x8x1xf32, #tpu.memory_space<vmem>>, vector<4x8x1xf32>,
    %cst_28 = arith.constant dense<0.000000e+00> : vector<4x8x8xf32>
    %34 = tpu.matmul %27, %16, %cst_28 {dimension_numbers = #tpu.dot_dimension_numbers<[2], [1], [1], [2], [0, 0, 0, 1, 1, 2], [0], [0]>} : vector<4x8x8xf32>, vector<4x8x8xf32>, vector<4x8x8xf32> -> vector<4x8x8xf32>
    %c0_29 = arith.constant 0 : index
    %c0_30 = arith.constant 0 : index
    %c0_31 = arith.constant 0 : index
    %35 = vector.load %arg14[%c0_29, %c0_30, %c0_31] : memref<4x8x8xf32, #tpu.memory_space<vmem>>, vector<4x8x8xf32>
    %36 = vector.broadcast %24 : vector<4x8x1xf32> to vector<4x8x8xf32>
    %37 = arith.mulf %36, %35 : vector<4x8x8xf32>
    %38 = arith.addf %37, %34 : vector<4x8x8xf32>
    %c0_32 = arith.constant 0 : index
    %c0_33 = arith.constant 0 : index
    %c0_34 = arith.constant 0 : index
    %39 = vector.load %arg14[%c0_32, %c0_33, %c0_34] : memref<4x8x8xf32, #tpu.memory_space<vmem>>, vector<4x8x8xf32>
    tpu.vector_store %arg14[%c0_32, %c0_33, %c0_34], %38 {strides = array<i32>} : memref<4x8x8xf32, #tpu.memory_space<vmem>>, vector<4x8x8xf32>,
    %c0_35 = arith.constant 0 : index
    %c0_36 = arith.constant 0 : index
    %c0_37 = arith.constant 0 : index
    %40 = vector.load %arg12[%c0_35, %c0_36, %c0_37] : memref<4x8x1xf32, #tpu.memory_space<vmem>>, vector<4x8x1xf32>
    tpu.vector_store %arg12[%c0_35, %c0_36, %c0_37], %22 {strides = array<i32>} : memref<4x8x1xf32, #tpu.memory_space<vmem>>, vector<4x8x1xf32>,
    %c0_i32_38 = arith.constant 0 : i32
    %41 = arith.cmpi eq, %arg2, %c0_i32_38 : i32
    %42 = arith.extui %41 : i1 to i32
    %c0_i32_39 = arith.constant 0 : i32
    %43 = arith.cmpi ne, %42, %c0_i32_39 : i32
    scf.if %43 {
      %c0_40 = arith.constant 0 : index
      %c0_41 = arith.constant 0 : index
      %c0_42 = arith.constant 0 : index
      %44 = vector.load %arg13[%c0_40, %c0_41, %c0_42] : memref<4x8x1xf32, #tpu.memory_space<vmem>>, vector<4x8x1xf32>
      %45 = tpu.reciprocal %44 : vector<4x8x1xf32> -> vector<4x8x1xf32>
      %c0_43 = arith.constant 0 : index
      %c0_44 = arith.constant 0 : index
      %c0_45 = arith.constant 0 : index
      %46 = vector.load %arg14[%c0_43, %c0_44, %c0_45] : memref<4x8x8xf32, #tpu.memory_space<vmem>>, vector<4x8x8xf32>
      %47 = vector.broadcast %45 : vector<4x8x1xf32> to vector<4x8x8xf32>
      %48 = arith.mulf %46, %47 : vector<4x8x8xf32>
      %c0_46 = arith.constant 0 : index
      %c0_47 = arith.constant 0 : index
      %c0_48 = arith.constant 0 : index
      %49 = vector.load %arg9[%c0_46, %c0_47, %c0_48] : memref<4x8x32xf32, #tpu.memory_space<vmem>>, vector<4x8x32xf32>
      %cst_49 = arith.constant dense<0.000000e+00> : vector<4x8x32xf32>
      %50 = tpu.matmul %48, %49, %cst_49 {dimension_numbers = #tpu.dot_dimension_numbers<[2], [1], [1], [2], [0, 0, 0, 1, 1, 2], [0], [0]>} : vector<4x8x8xf32>, vector<4x8x32xf32>, vector<4x8x32xf32> -> vector<4x8x32xf32>
      %cst_50 = arith.constant dense<0.000000e+00> : vector<8x32xf32>
      %51 = vector.multi_reduction <add>, %50, %cst_50 [0] : vector<4x8x32xf32> to vector<8x32xf32>
      %c0_51 = arith.constant 0 : index
      %c0_52 = arith.constant 0 : index
      %c0_53 = arith.constant 0 : index
      %52 = vector.load %arg10[%c0_51, %c0_52, %c0_53] : memref<1x8x32xf32, #tpu.memory_space<vmem>>, vector<1x8x32xf32>
      %53 = vector.shape_cast %52 : vector<1x8x32xf32> to vector<8x32xf32>
      %54 = vector.shape_cast %51 : vector<8x32xf32> to vector<1x8x32xf32>
      tpu.vector_store %arg10[%c0_51, %c0_52, %c0_53], %54 {strides = array<i32>} : memref<1x8x32xf32, #tpu.memory_space<vmem>>, vector<1x8x32xf32>,
    } else {
    }
    return
  }
  func.func @transform_0(%arg0: i32, %arg1: i32, %arg2: i32) -> (i32, i32, i32) {
    %c0_i32 = arith.constant 0 : i32
    %c0_i32_0 = arith.constant 0 : i32
    return %arg0, %arg1, %c0_i32 : i32, i32, i32
  }
  func.func @transform_1(%arg0: i32, %arg1: i32, %arg2: i32) -> (i32, i32, i32) {
    %c0_i32 = arith.constant 0 : i32
    %c0_i32_0 = arith.constant 0 : i32
    return %arg0, %arg2, %c0_i32 : i32, i32, i32
  }
  func.func @transform_2(%arg0: i32, %arg1: i32, %arg2: i32) -> (i32, i32, i32) {
    %c0_i32 = arith.constant 0 : i32
    %c0_i32_0 = arith.constant 0 : i32
    return %arg0, %arg2, %c0_i32 : i32, i32, i32
  }
  func.func @transform_3(%arg0: i32, %arg1: i32, %arg2: i32) -> (i32, i32, i32) {
    %c0_i32 = arith.constant 0 : i32
    %c0_i32_0 = arith.constant 0 : i32
    %c0_i32_1 = arith.constant 0 : i32
    %c0_i32_2 = arith.constant 0 : i32
    return %c0_i32, %c0_i32_0, %c0_i32_1 : i32, i32, i32
  }
  func.func @transform_4(%arg0: i32, %arg1: i32, %arg2: i32) -> (i32, i32, i32) {
    %c0_i32 = arith.constant 0 : i32
    %c0_i32_0 = arith.constant 0 : i32
    %c0_i32_1 = arith.constant 0 : i32
    %c0_i32_2 = arith.constant 0 : i32
    return %c0_i32, %c0_i32_0, %c0_i32_1 : i32, i32, i32
  }
  func.func @transform_5(%arg0: i32, %arg1: i32, %arg2: i32) -> (i32, i32, i32) {
    %c0_i32 = arith.constant 0 : i32
    %c0_i32_0 = arith.constant 0 : i32
    %c0_i32_1 = arith.constant 0 : i32
    %c0_i32_2 = arith.constant 0 : i32
    return %c0_i32, %c0_i32_0, %c0_i32_1 : i32, i32, i32
  }
  func.func @transform_6(%arg0: i32, %arg1: i32, %arg2: i32) -> (i32, i32, i32) {
    %c0_i32 = arith.constant 0 : i32
    %c0_i32_0 = arith.constant 0 : i32
    %c0_i32_1 = arith.constant 0 : i32
    %c0_i32_2 = arith.constant 0 : i32
    return %c0_i32, %c0_i32_0, %c0_i32_1 : i32, i32, i32
  }
  func.func @transform_7(%arg0: i32, %arg1: i32, %arg2: i32) -> (i32, i32, i32) {
    %c0_i32 = arith.constant 0 : i32
    %c0_i32_0 = arith.constant 0 : i32
    return %arg0, %arg1, %c0_i32 : i32, i32, i32
  }
}

module attributes {stable_mosaic.version = 11 : i64} {
  func.func @_mha_flash_kernel(%arg0: i32, %arg1: i32, %arg2: i32, %arg3: memref<1x8x32xf32, #tpu.memory_space<vmem>>, %arg4: memref<1x8x32xf32, #tpu.memory_space<vmem>>, %arg5: memref<1x8x32xf32, #tpu.memory_space<vmem>>, %arg6: memref<4x32x8xf32, #tpu.memory_space<vmem>>, %arg7: memref<4x32x8xf32, #tpu.memory_space<vmem>>, %arg8: memref<4x32x8xf32, #tpu.memory_space<vmem>>, %arg9: memref<4x8x32xf32, #tpu.memory_space<vmem>>, %arg10: memref<1x8x32xf32, #tpu.memory_space<vmem>>, %arg11: memref<4x8x8xf32, #tpu.memory_space<vmem>>, %arg12: memref<4x8x1xf32, #tpu.memory_space<vmem>>, %arg13: memref<4x8x1xf32, #tpu.memory_space<vmem>>, %arg14: memref<4x8x8xf32, #tpu.memory_space<vmem>>) attributes {dimension_semantics = [#tpu.dimension_semantics<parallel>, #tpu.dimension_semantics<parallel>, #tpu.dimension_semantics<arbitrary>], iteration_bounds = array<i64: 2, 1, 1>, scalar_prefetch = 0 : i64, scratch_operands = 4 : i64, tpu.core_type = #tpu.core_type<tc>, window_params = [{transform_indices = @transform_0, window_bounds = array<i64: 1, 8, 32>}, {transform_indices = @transform_1, window_bounds = array<i64: 1, 8, 32>}, {transform_indices = @transform_2, window_bounds = array<i64: 1, 8, 32>}, {pipeline_mode = #tpu.pipeline_mode<synchronous>, transform_indices = @transform_3, window_bounds = array<i64: 4, 32, 8>}, {pipeline_mode = #tpu.pipeline_mode<synchronous>, transform_indices = @transform_4, window_bounds = array<i64: 4, 32, 8>}, {pipeline_mode = #tpu.pipeline_mode<synchronous>, transform_indices = @transform_5, window_bounds = array<i64: 4, 32, 8>}, {pipeline_mode = #tpu.pipeline_mode<synchronous>, transform_indices = @transform_6, window_bounds = array<i64: 4, 8, 32>}, {transform_indices = @transform_7, window_bounds = array<i64: 1, 8, 32>}]} {
    %c0_i32 = arith.constant 0 : i32
    %0 = arith.cmpi eq, %arg2, %c0_i32 : i32
    %1 = arith.extui %0 : i1 to i32
    %c0_i32_0 = arith.constant 0 : i32
    %2 = arith.cmpi ne, %1, %c0_i32_0 : i32
    scf.if %2 {
      %c0_40 = arith.constant 0 : index
      %c0_41 = arith.constant 0 : index
      %c0_42 = arith.constant 0 : index
      %44 = vector.load %arg3[%c0_40, %c0_41, %c0_42] : memref<1x8x32xf32, #tpu.memory_space<vmem>>, vector<1x8x32xf32>
      %45 = vector.shape_cast %44 : vector<1x8x32xf32> to vector<8x32xf32>
      %46 = vector.shape_cast %45 : vector<8x32xf32> to vector<1x8x32xf32>
      %47 = vector.shape_cast %46 : vector<1x8x32xf32> to vector<1x8x32xf32>
      %48 = vector.broadcast %47 : vector<1x8x32xf32> to vector<4x8x32xf32>
      %c0_43 = arith.constant 0 : index
      %c0_44 = arith.constant 0 : index
      %c0_45 = arith.constant 0 : index
      %49 = vector.load %arg6[%c0_43, %c0_44, %c0_45] : memref<4x32x8xf32, #tpu.memory_space<vmem>>, vector<4x32x8xf32>
      %cst_46 = arith.constant dense<0.000000e+00> : vector<4x8x8xf32>
      %50 = tpu.matmul %48, %49, %cst_46 {dimension_numbers = #tpu.dot_dimension_numbers<[2], [1], [1], [2], [0, 0, 0, 1, 1, 2], [0], [0]>} : vector<4x8x32xf32>, vector<4x32x8xf32>, vector<4x8x8xf32> -> vector<4x8x8xf32>
      %cst_47 = arith.constant 0.353553385 : f32
      %51 = vector.broadcast %cst_47 : f32 to vector<4x8x8xf32>
      %52 = arith.mulf %50, %51 : vector<4x8x8xf32>
      %c0_48 = arith.constant 0 : index
      %c0_49 = arith.constant 0 : index
      %c0_50 = arith.constant 0 : index
      %53 = vector.load %arg11[%c0_48, %c0_49, %c0_50] : memref<4x8x8xf32, #tpu.memory_space<vmem>>, vector<4x8x8xf32>
      tpu.vector_store %arg11[%c0_48, %c0_49, %c0_50], %52 {strides = array<i32>} : memref<4x8x8xf32, #tpu.memory_space<vmem>>, vector<4x8x8xf32>,
      %cst_51 = arith.constant 0xFF800000 : f32
      %54 = vector.broadcast %cst_51 : f32 to vector<4x8x1xf32>
      %c0_52 = arith.constant 0 : index
      %c0_53 = arith.constant 0 : index
      %c0_54 = arith.constant 0 : index
      %55 = vector.load %arg12[%c0_52, %c0_53, %c0_54] : memref<4x8x1xf32, #tpu.memory_space<vmem>>, vector<4x8x1xf32>
      tpu.vector_store %arg12[%c0_52, %c0_53, %c0_54], %54 {strides = array<i32>} : memref<4x8x1xf32, #tpu.memory_space<vmem>>, vector<4x8x1xf32>,
      %cst_55 = arith.constant 0.000000e+00 : f32
      %56 = vector.broadcast %cst_55 : f32 to vector<4x8x1xf32>
      %c0_56 = arith.constant 0 : index
      %c0_57 = arith.constant 0 : index
      %c0_58 = arith.constant 0 : index
      %57 = vector.load %arg13[%c0_56, %c0_57, %c0_58] : memref<4x8x1xf32, #tpu.memory_space<vmem>>, vector<4x8x1xf32>
      tpu.vector_store %arg13[%c0_56, %c0_57, %c0_58], %56 {strides = array<i32>} : memref<4x8x1xf32, #tpu.memory_space<vmem>>, vector<4x8x1xf32>,
      %cst_59 = arith.constant 0.000000e+00 : f32
      %58 = vector.broadcast %cst_59 : f32 to vector<4x8x8xf32>
      %c0_60 = arith.constant 0 : index
      %c0_61 = arith.constant 0 : index
      %c0_62 = arith.constant 0 : index
      %59 = vector.load %arg14[%c0_60, %c0_61, %c0_62] : memref<4x8x8xf32, #tpu.memory_space<vmem>>, vector<4x8x8xf32>
      tpu.vector_store %arg14[%c0_60, %c0_61, %c0_62], %58 {strides = array<i32>} : memref<4x8x8xf32, #tpu.memory_space<vmem>>, vector<4x8x8xf32>,
    } else {
    }
    %c0 = arith.constant 0 : index
    %c0_1 = arith.constant 0 : index
    %c0_2 = arith.constant 0 : index
    %3 = vector.load %arg4[%c0, %c0_1, %c0_2] : memref<1x8x32xf32, #tpu.memory_space<vmem>>, vector<1x8x32xf32>
    %4 = vector.shape_cast %3 : vector<1x8x32xf32> to vector<8x32xf32>
    %c0_3 = arith.constant 0 : index
    %c0_4 = arith.constant 0 : index
    %c0_5 = arith.constant 0 : index
    %5 = vector.load %arg5[%c0_3, %c0_4, %c0_5] : memref<1x8x32xf32, #tpu.memory_space<vmem>>, vector<1x8x32xf32>
    %6 = vector.shape_cast %5 : vector<1x8x32xf32> to vector<8x32xf32>
    %7 = vector.shape_cast %4 : vector<8x32xf32> to vector<1x8x32xf32>
    %8 = vector.shape_cast %7 : vector<1x8x32xf32> to vector<1x8x32xf32>
    %9 = vector.broadcast %8 : vector<1x8x32xf32> to vector<4x8x32xf32>
    %10 = vector.shape_cast %6 : vector<8x32xf32> to vector<1x8x32xf32>
    %11 = vector.shape_cast %10 : vector<1x8x32xf32> to vector<1x8x32xf32>
    %12 = vector.broadcast %11 : vector<1x8x32xf32> to vector<4x8x32xf32>
    %c0_6 = arith.constant 0 : index
    %c0_7 = arith.constant 0 : index
    %c0_8 = arith.constant 0 : index
    %13 = vector.load %arg7[%c0_6, %c0_7, %c0_8] : memref<4x32x8xf32, #tpu.memory_space<vmem>>, vector<4x32x8xf32>
    %cst = arith.constant dense<0.000000e+00> : vector<4x8x8xf32>
    %14 = tpu.matmul %9, %13, %cst {dimension_numbers = #tpu.dot_dimension_numbers<[2], [1], [1], [2], [0, 0, 0, 1, 1, 2], [0], [0]>} : vector<4x8x32xf32>, vector<4x32x8xf32>, vector<4x8x8xf32> -> vector<4x8x8xf32>
    %c0_9 = arith.constant 0 : index
    %c0_10 = arith.constant 0 : index
    %c0_11 = arith.constant 0 : index
    %15 = vector.load %arg8[%c0_9, %c0_10, %c0_11] : memref<4x32x8xf32, #tpu.memory_space<vmem>>, vector<4x32x8xf32>
    %cst_12 = arith.constant dense<0.000000e+00> : vector<4x8x8xf32>
    %16 = tpu.matmul %12, %15, %cst_12 {dimension_numbers = #tpu.dot_dimension_numbers<[2], [1], [1], [2], [0, 0, 0, 1, 1, 2], [0], [0]>} : vector<4x8x32xf32>, vector<4x32x8xf32>, vector<4x8x8xf32> -> vector<4x8x8xf32>
    %c0_13 = arith.constant 0 : index
    %c0_14 = arith.constant 0 : index
    %c0_15 = arith.constant 0 : index
    %17 = vector.load %arg11[%c0_13, %c0_14, %c0_15] : memref<4x8x8xf32, #tpu.memory_space<vmem>>, vector<4x8x8xf32>
    %cst_16 = arith.constant dense<0.000000e+00> : vector<4x8x8xf32>
    %18 = tpu.matmul %17, %14, %cst_16 {dimension_numbers = #tpu.dot_dimension_numbers<[2], [2], [1], [1], [0, 0, 0, 1, 1, 1], [0], [0]>} : vector<4x8x8xf32>, vector<4x8x8xf32>, vector<4x8x8xf32> -> vector<4x8x8xf32>
    %c0_17 = arith.constant 0 : index
    %c0_18 = arith.constant 0 : index
    %c0_19 = arith.constant 0 : index
    %19 = vector.load %arg12[%c0_17, %c0_18, %c0_19] : memref<4x8x1xf32, #tpu.memory_space<vmem>>, vector<4x8x1xf32>
    %cst_20 = arith.constant dense<0xFF800000> : vector<4x8xf32>
    %20 = vector.multi_reduction <maximumf>, %18, %cst_20 [2] : vector<4x8x8xf32> to vector<4x8xf32>
    %21 = vector.shape_cast %20 : vector<4x8xf32> to vector<4x8x1xf32>
    %22 = arith.maximumf %19, %21 : vector<4x8x1xf32>
    %23 = arith.subf %19, %22 : vector<4x8x1xf32>
    %24 = math.exp %23 : vector<4x8x1xf32>
    %25 = vector.broadcast %22 : vector<4x8x1xf32> to vector<4x8x8xf32>
    %26 = arith.subf %18, %25 : vector<4x8x8xf32>
    %27 = math.exp %26 : vector<4x8x8xf32>
    %c0_21 = arith.constant 0 : index
    %c0_22 = arith.constant 0 : index
    %c0_23 = arith.constant 0 : index
    %28 = vector.load %arg13[%c0_21, %c0_22, %c0_23] : memref<4x8x1xf32, #tpu.memory_space<vmem>>, vector<4x8x1xf32>
    %29 = arith.mulf %24, %28 : vector<4x8x1xf32>
    %cst_24 = arith.constant dense<0.000000e+00> : vector<4x8xf32>
    %30 = vector.multi_reduction <add>, %27, %cst_24 [2] : vector<4x8x8xf32> to vector<4x8xf32>
    %31 = vector.shape_cast %30 : vector<4x8xf32> to vector<4x8x1xf32>
    %32 = arith.addf %29, %31 : vector<4x8x1xf32>
    %c0_25 = arith.constant 0 : index
    %c0_26 = arith.constant 0 : index
    %c0_27 = arith.constant 0 : index
    %33 = vector.load %arg13[%c0_25, %c0_26, %c0_27] : memref<4x8x1xf32, #tpu.memory_space<vmem>>, vector<4x8x1xf32>
    tpu.vector_store %arg13[%c0_25, %c0_26, %c0_27], %32 {strides = array<i32>} : memref<4x8x1xf32, #tpu.memory_space<vmem>>, vector<4x8x1xf32>,
    %cst_28 = arith.constant dense<0.000000e+00> : vector<4x8x8xf32>
    %34 = tpu.matmul %27, %16, %cst_28 {dimension_numbers = #tpu.dot_dimension_numbers<[2], [1], [1], [2], [0, 0, 0, 1, 1, 2], [0], [0]>} : vector<4x8x8xf32>, vector<4x8x8xf32>, vector<4x8x8xf32> -> vector<4x8x8xf32>
    %c0_29 = arith.constant 0 : index
    %c0_30 = arith.constant 0 : index
    %c0_31 = arith.constant 0 : index
    %35 = vector.load %arg14[%c0_29, %c0_30, %c0_31] : memref<4x8x8xf32, #tpu.memory_space<vmem>>, vector<4x8x8xf32>
    %36 = vector.broadcast %24 : vector<4x8x1xf32> to vector<4x8x8xf32>
    %37 = arith.mulf %36, %35 : vector<4x8x8xf32>
    %38 = arith.addf %37, %34 : vector<4x8x8xf32>
    %c0_32 = arith.constant 0 : index
    %c0_33 = arith.constant 0 : index
    %c0_34 = arith.constant 0 : index
    %39 = vector.load %arg14[%c0_32, %c0_33, %c0_34] : memref<4x8x8xf32, #tpu.memory_space<vmem>>, vector<4x8x8xf32>
    tpu.vector_store %arg14[%c0_32, %c0_33, %c0_34], %38 {strides = array<i32>} : memref<4x8x8xf32, #tpu.memory_space<vmem>>, vector<4x8x8xf32>,
    %c0_35 = arith.constant 0 : index
    %c0_36 = arith.constant 0 : index
    %c0_37 = arith.constant 0 : index
    %40 = vector.load %arg12[%c0_35, %c0_36, %c0_37] : memref<4x8x1xf32, #tpu.memory_space<vmem>>, vector<4x8x1xf32>
    tpu.vector_store %arg12[%c0_35, %c0_36, %c0_37], %22 {strides = array<i32>} : memref<4x8x1xf32, #tpu.memory_space<vmem>>, vector<4x8x1xf32>,
    %c0_i32_38 = arith.constant 0 : i32
    %41 = arith.cmpi eq, %arg2, %c0_i32_38 : i32
    %42 = arith.extui %41 : i1 to i32
    %c0_i32_39 = arith.constant 0 : i32
    %43 = arith.cmpi ne, %42, %c0_i32_39 : i32
    scf.if %43 {
      %c0_40 = arith.constant 0 : index
      %c0_41 = arith.constant 0 : index
      %c0_42 = arith.constant 0 : index
      %44 = vector.load %arg13[%c0_40, %c0_41, %c0_42] : memref<4x8x1xf32, #tpu.memory_space<vmem>>, vector<4x8x1xf32>
      %45 = tpu.reciprocal %44 : vector<4x8x1xf32> -> vector<4x8x1xf32>
      %c0_43 = arith.constant 0 : index
      %c0_44 = arith.constant 0 : index
      %c0_45 = arith.constant 0 : index
      %46 = vector.load %arg14[%c0_43, %c0_44, %c0_45] : memref<4x8x8xf32, #tpu.memory_space<vmem>>, vector<4x8x8xf32>
      %47 = vector.broadcast %45 : vector<4x8x1xf32> to vector<4x8x8xf32>
      %48 = arith.mulf %46, %47 : vector<4x8x8xf32>
      %c0_46 = arith.constant 0 : index
      %c0_47 = arith.constant 0 : index
      %c0_48 = arith.constant 0 : index
      %49 = vector.load %arg9[%c0_46, %c0_47, %c0_48] : memref<4x8x32xf32, #tpu.memory_space<vmem>>, vector<4x8x32xf32>
      %cst_49 = arith.constant dense<0.000000e+00> : vector<4x8x32xf32>
      %50 = tpu.matmul %48, %49, %cst_49 {dimension_numbers = #tpu.dot_dimension_numbers<[2], [1], [1], [2], [0, 0, 0, 1, 1, 2], [0], [0]>} : vector<4x8x8xf32>, vector<4x8x32xf32>, vector<4x8x32xf32> -> vector<4x8x32xf32>
      %cst_50 = arith.constant dense<0.000000e+00> : vector<8x32xf32>
      %51 = vector.multi_reduction <add>, %50, %cst_50 [0] : vector<4x8x32xf32> to vector<8x32xf32>
      %c0_51 = arith.constant 0 : index
      %c0_52 = arith.constant 0 : index
      %c0_53 = arith.constant 0 : index
      %52 = vector.load %arg10[%c0_51, %c0_52, %c0_53] : memref<1x8x32xf32, #tpu.memory_space<vmem>>, vector<1x8x32xf32>
      %53 = vector.shape_cast %52 : vector<1x8x32xf32> to vector<8x32xf32>
      %54 = vector.shape_cast %51 : vector<8x32xf32> to vector<1x8x32xf32>
      tpu.vector_store %arg10[%c0_51, %c0_52, %c0_53], %54 {strides = array<i32>} : memref<1x8x32xf32, #tpu.memory_space<vmem>>, vector<1x8x32xf32>,
    } else {
    }
    return
  }
  func.func @transform_0(%arg0: i32, %arg1: i32, %arg2: i32) -> (i32, i32, i32) {
    %c0_i32 = arith.constant 0 : i32
    %c0_i32_0 = arith.constant 0 : i32
    return %arg0, %arg1, %c0_i32 : i32, i32, i32
  }
  func.func @transform_1(%arg0: i32, %arg1: i32, %arg2: i32) -> (i32, i32, i32) {
    %c0_i32 = arith.constant 0 : i32
    %c0_i32_0 = arith.constant 0 : i32
    return %arg0, %arg2, %c0_i32 : i32, i32, i32
  }
  func.func @transform_2(%arg0: i32, %arg1: i32, %arg2: i32) -> (i32, i32, i32) {
    %c0_i32 = arith.constant 0 : i32
    %c0_i32_0 = arith.constant 0 : i32
    return %arg0, %arg2, %c0_i32 : i32, i32, i32
  }
  func.func @transform_3(%arg0: i32, %arg1: i32, %arg2: i32) -> (i32, i32, i32) {
    %c0_i32 = arith.constant 0 : i32
    %c0_i32_0 = arith.constant 0 : i32
    %c0_i32_1 = arith.constant 0 : i32
    %c0_i32_2 = arith.constant 0 : i32
    return %c0_i32, %c0_i32_0, %c0_i32_1 : i32, i32, i32
  }
  func.func @transform_4(%arg0: i32, %arg1: i32, %arg2: i32) -> (i32, i32, i32) {
    %c0_i32 = arith.constant 0 : i32
    %c0_i32_0 = arith.constant 0 : i32
    %c0_i32_1 = arith.constant 0 : i32
    %c0_i32_2 = arith.constant 0 : i32
    return %c0_i32, %c0_i32_0, %c0_i32_1 : i32, i32, i32
  }
  func.func @transform_5(%arg0: i32, %arg1: i32, %arg2: i32) -> (i32, i32, i32) {
    %c0_i32 = arith.constant 0 : i32
    %c0_i32_0 = arith.constant 0 : i32
    %c0_i32_1 = arith.constant 0 : i32
    %c0_i32_2 = arith.constant 0 : i32
    return %c0_i32, %c0_i32_0, %c0_i32_1 : i32, i32, i32
  }
  func.func @transform_6(%arg0: i32, %arg1: i32, %arg2: i32) -> (i32, i32, i32) {
    %c0_i32 = arith.constant 0 : i32
    %c0_i32_0 = arith.constant 0 : i32
    %c0_i32_1 = arith.constant 0 : i32
    %c0_i32_2 = arith.constant 0 : i32
    return %c0_i32, %c0_i32_0, %c0_i32_1 : i32, i32, i32
  }
  func.func @transform_7(%arg0: i32, %arg1: i32, %arg2: i32) -> (i32, i32, i32) {
    %c0_i32 = arith.constant 0 : i32
    %c0_i32_0 = arith.constant 0 : i32
    return %arg0, %arg1, %c0_i32 : i32, i32, i32
  }
}

</mosaic_0001>

<bundles_post_ra>
// kernel: tpu_custom_call.1
= control target key start
LH: loop header
LB: loop body
LE: loop exit
PB: predicated region body
PF: predicated region fallthrough
CT: control target
= control target key end

     0   :  { %12 = vsyncpa [#allocation7], 0  ;;  %s3468_s0 = inlined_call_operand.vmem [shape: f32[2,8,32], index: 0, kind: input, shape index: {}]   ;;  %s3469_s1 = inlined_call_operand.vmem [shape: f32[2,8,32], index: 1, kind: input, shape index: {}]   ;;  %s3470_s2 = inlined_call_operand.vmem [shape: f32[2,8,32], index: 2, kind: input, shape index: {}]   ;;  %s3471_s3 = inlined_call_operand.vmem [shape: f32[4,32,8], index: 3, kind: input, shape index: {}]   ;;  %s3472_s4 = inlined_call_operand.vmem [shape: f32[4,32,8], index: 4, kind: input, shape index: {}]   ;;  %s3473_s5 = inlined_call_operand.vmem [shape: f32[4,32,8], index: 5, kind: input, shape index: {}]   ;;  %s3474_s6 = inlined_call_operand.vmem [shape: f32[4,8,32], index: 6, kind: input, shape index: {}]   ;;  %s3475_s7 = inlined_call_operand.hbm [shape: f32[2,8,32], index: 7, kind: output, shape index: {}]  }
   0x1   :  { %14 = vsyncpa [#allocation7 + $0x1], 0  ;;  %s3011_s24 = smov 0   ;;  %s3013_s25 = smov 0  }
   0x2   :  { %s3015_s26 = smov 0   ;;  %s3017_s27 = smov 0  }
   0x3   :  { %s3019_s28 = smov 0   ;;  %s3021_s29 = smov 0  }
   0x4 LB: > { %s2486_s30 = sadd.s32 4294967295, %s2964_s29   ;;  %s2487_s8 = sadd.s32 4294967294, %s2964_s29   ;;  %s2964_s29 = sphi %s3021_s29, %s20_s29   ;;  %s2960_s28 = sphi %s3019_s28, %s3482_s28   ;;  %s2956_s27 = sphi %s3017_s27, %s3481_s27   ;;  %s2952_s26 = sphi %s3015_s26, %s3480_s26   ;;  %s2948_s25 = sphi %s3013_s25, %s3479_s25   ;;  %s2944_s24 = sphi %s3011_s24, %s3478_s24  }
   0x5   : > { %s39_s9 = sadd.s32 1, %s2960_s28  ;;  %s216_s10 = sadd.s32 1, %s2952_s26 }
   0x6   : > { %p41_p0 = scmp.ge.s32.totalorder %s39_s9, 2  ;;  %p226_p1 = scmp.ne.s32.totalorder %s2952_s26, %s2948_s25 }
   0x7   : > { %p227_p2 = scmp.eq.s32.totalorder %s2486_s30, 1  ;;  %p232_p3 = scmp.ne.s32.totalorder %s2948_s25, %s2944_s24 }
   0x8   : > { %s3484_s9 = smov (%p41_p0, %s39_s9), 0  ;;  %p233_p5 = scmp.eq.s32.totalorder %s2487_s8, 1 }
   0x9   : > { %p3051_p4 = por %p227_p2, %p226_p1  ;;  %s211_s12 = ssub.s32 %s2960_s28, %s3484_s9 }
   0xa   : > { %p2490_p6 = scmp.ge.s32.totalorder %s2964_s29, 1  ;;  %p214_p7 = scmp.eq.s32.totalorder %s211_s12, 0 }
   0xb   : > { %p3058_p8 = por %p233_p5, %p232_p3  ;;  %p293_p9 = scmp.lt.s32.totalorder %s2964_s29, 3 }
   0xc   : > { %s3064_s14 = scalar_select %p214_p7, %s2952_s26, %s216_s10  }
   0xd   : > { %p294_p10 = pnand %p2490_p6, %p293_p9 }
   0xe   : > { %p341_p11 = scmp.lt.s32.totalorder (!%p294_p10), %s2956_s27, 1  ;;  %s338_s19 = sand.u32 (!%p294_p10), 1, %s2948_s25  }
   0xf   : > { %297 = sbr.rel (%p294_p10) target bundleno = 1234 (0x4d2), region = 48  ;;  %s2368_s10 = scalar_lea.sflag (!%p294_p10), [#allocation7], %s338_s19 }
  0x14   : > { %v370_v0 = vld [vmem:[%s3471_s3 + $0x18] sm:$0xff]  ;;  %v2966_v2 = vmov 0.0   ;;  %v369_v3 = vld [vmem:[%s3471_s3 + $0x10] sm:$0xff]  ;;  %s342_s23 = scalar_select %p341_p11, %s2956_s27, 1  ;;  %v368_v5 = vld [vmem:[%s3471_s3 + $0x8] sm:$0xff]  ;;  %vm383_vm0 = vcmask 261120  }
  0x15   : > { %v374_v1 = vld [vmem:[%s3471_s3 + $0x38] sm:$0xff]  ;;  %2611 = vmatprep.subr.mxu0 %v2966_v2  ;;  %2622 = vmatprep.subr.mxu1 %v2966_v2  ;;  %v373_v4 = vld [vmem:[%s3471_s3 + $0x30] sm:$0xff]  ;;  %v372_v6 = vld [vmem:[%s3471_s3 + $0x28] sm:$0xff]  ;;  %vm2967_vm1 = vmmov 0   ;;  %vm671_vm2 = vcmask 64512   ;;  %vm676_vm3 = vcmask 7168  }
  0x16   : > { %2612 = vmatpush3.msra.mxu0 %v370_v0  ;;  %2623 = vmatpush3.msra.mxu1 %v374_v1  ;;  %s3090_s15 = sshll.u32 %s342_s23, 3  ;;  %v367_v7 = vld [vmem:[%s3471_s3] sm:$0xff]  ;;  %v378_v10 = vld [vmem:[%s3471_s3 + $0x58] sm:$0xff]  ;;  %v377_v12 = vld [vmem:[%s3471_s3 + $0x50] sm:$0xff]  ;;  %685 = vst.msk [vmem:[#allocation5] sm:$0xff] %vm671_vm2, %v2966_v2 }
  0x17   : > { %2613 = vmatprep.subr.mxu0 %v2966_v2  ;;  %2624 = vmatprep.subr.mxu1 %v2966_v2  ;;  %s347_s20 = scalar_lea.vmem %s3468_s0, %s3090_s15  ;;  %v371_v8 = vld [vmem:[%s3471_s3 + $0x20] sm:$0xff]  ;;  %v382_v11 = vld [vmem:[%s3471_s3 + $0x78] sm:$0xff]  ;;  %v381_v13 = vld [vmem:[%s3471_s3 + $0x70] sm:$0xff]  ;;  %s354_s17 = scalar_lea.vmem %s3469_s1, %s3090_s15  ;;  %686 = vst.msk [vmem:[#allocation5 + $0x8] sm:$0xff] %vm671_vm2, %v2966_v2 }
  0x18   : > { %2614 = vmatpush3.msra.mxu0 %v369_v3  ;;  %2625 = vmatpush3.msra.mxu1 %v373_v4  ;;  %v366_v9 = vld [vmem:[%s347_s20] sm:$0xff]  ;;  %v376_v14 = vld [vmem:[%s3471_s3 + $0x48] sm:$0xff]  ;;  %v694_v18 = vld [vmem:[%s3472_s4 + $0x18] sm:$0xff]  ;;  %687 = vst.msk [vmem:[#allocation5 + $0x10] sm:$0xff] %vm671_vm2, %v2966_v2  ;;  %s361_s16 = scalar_lea.vmem %s3470_s2, %s3090_s15  ;;  %s2491_s20 = sshll.u32 %s338_s19, 3 }
  0x19   : > { %2615 = vmatprep.subr.mxu0 %v2966_v2  ;;  %2626 = vmatprep.subr.mxu1 %v2966_v2  ;;  %v380_v15 = vld [vmem:[%s3471_s3 + $0x68] sm:$0xff]  ;;  %v375_v16 = vld [vmem:[%s3471_s3 + $0x40] sm:$0xff]  ;;  %v698_v19 = vld [vmem:[%s3472_s4 + $0x38] sm:$0xff]  ;;  %688 = vst.msk [vmem:[#allocation5 + $0x18] sm:$0xff] %vm671_vm2, %v2966_v2  ;;  %s2524_s15 = sshll.u32 %s2956_s27, 7  ;;  %s340_s21 = scalar_lea.vmem [#allocation6], %s2491_s20 }
  0x1a   : > { %2616 = vmatpush3.msra.mxu0 %v368_v5  ;;  %2627 = vmatpush3.msra.mxu1 %v372_v6  ;;  %v379_v17 = vld [vmem:[%s3471_s3 + $0x60] sm:$0xff]  ;;  %v693_v20 = vld [vmem:[%s3472_s4 + $0x10] sm:$0xff]  ;;  %v692_v22 = vld [vmem:[%s3472_s4 + $0x8] sm:$0xff]  ;;  %681 = vst.msk [vmem:[#allocation4] sm:$0xff] %vm676_vm3, %v2966_v2  ;;  %s2382_s22 = sshll.u32 %s340_s21, 4  ;;  %s2380_s8 = scalar_lea.hbm %s3475_s7, %s2524_s15  ;;  %s2383_s22 = int_to_ptr.vmem [resolvable:$true] %s2382_s22 }
  0x1b   : > { %2617 = vmatprep.subr.mxu0 %v2966_v2  ;;  %2628 = vmatprep.subr.mxu1 %v2966_v2  ;;  %v697_v21 = vld [vmem:[%s3472_s4 + $0x30] sm:$0xff]  ;;  %v696_v23 = vld [vmem:[%s3472_s4 + $0x28] sm:$0xff]  ;;  %v691_v24 = vld [vmem:[%s3472_s4] sm:$0xff]  ;;  %682 = vst.msk [vmem:[#allocation4 + $0x8] sm:$0xff] %vm676_vm3, %v2966_v2  ;;  %s2888_s12 = scalar_lea.vmem %s2383_s22, 128  ;;  %s2970_s27 = smov [#allocation6]  }
  0x1c   : > { %2618 = vmatpush3.msra.mxu0 %v367_v7  ;;  %2619 = vmatprep.mubr.msk.f32.mxu0 %vm2967_vm1, %v2966_v2  ;;  %v695_v25 = vld [vmem:[%s3472_s4 + $0x20] sm:$0xff]  ;;  %v702_v27 = vld [vmem:[%s3472_s4 + $0x58] sm:$0xff]  ;;  %v701_v29 = vld [vmem:[%s3472_s4 + $0x50] sm:$0xff]  ;;  %683 = vst.msk [vmem:[#allocation4 + $0x10] sm:$0xff] %vm676_vm3, %v2966_v2  ;;  %p2889_p12 = scmp.ne.s32.totalorder %s2383_s22, %s2888_s12 }
  0x1d   : > { %2629 = vmatpush3.msra.mxu1 %v371_v8  ;;  %2620 = vmatmul.mubr.msk.f32.vlgmr.msra.gmra.mxu0 %vm383_vm0, %v366_v9  ;;  %v689_v26 = vld [vmem:[%s354_s17] sm:$0xff]  ;;  %v706_v28 = vld [vmem:[%s3472_s4 + $0x78] sm:$0xff]  ;;  %v705_v30 = vld [vmem:[%s3472_s4 + $0x70] sm:$0xff]  ;;  %684 = vst.msk [vmem:[#allocation4 + $0x18] sm:$0xff] %vm676_vm3, %v2966_v2 }
  0x1e   : > { %2630 = vmatprep.mubr.msk.f32.mxu1 %vm2967_vm1, %v2966_v2  ;;  %2633 = vmatprep.subr.mxu0 %v2966_v2  ;;  %v700_v31 = vld [vmem:[%s3472_s4 + $0x48] sm:$0xff]  ;;  %v699_v33 = vld [vmem:[%s3472_s4 + $0x40] sm:$0xff]  ;;  %v994_v35 = vld [vmem:[%s3473_s5 + $0x18] sm:$0xff]  ;;  %p2890_p13 = pnand %p2889_p12, %p3051_p4 }
  0x1f   : > { %2644 = vmatprep.subr.mxu1 %v2966_v2  ;;  %2631 = vmatmul.mubr.msk.f32.vlgmr.msra.gmra.mxu1 %vm383_vm0, %v366_v9  ;;  %v704_v32 = vld [vmem:[%s3472_s4 + $0x68] sm:$0xff]  ;;  %v703_v34 = vld [vmem:[%s3472_s4 + $0x60] sm:$0xff]  ;;  %v998_v36 = vld [vmem:[%s3473_s5 + $0x38] sm:$0xff] }
  0x20   : > { %2634 = vmatpush3.msra.mxu0 %v378_v10  ;;  %2645 = vmatpush3.msra.mxu1 %v382_v11  ;;  %v993_v37 = vld [vmem:[%s3473_s5 + $0x10] sm:$0xff]  ;;  %v992_v39 = vld [vmem:[%s3473_s5 + $0x8] sm:$0xff]  ;;  %v991_v41 = vld [vmem:[%s3473_s5] sm:$0xff]  ;;  %p2891_p0 = pneg %p2890_p13 }
  0x21   : > { %2635 = vmatprep.subr.mxu0 %v2966_v2  ;;  %2646 = vmatprep.subr.mxu1 %v2966_v2  ;;  %v997_v38 = vld [vmem:[%s3473_s5 + $0x30] sm:$0xff]  ;;  %v996_v40 = vld [vmem:[%s3473_s5 + $0x28] sm:$0xff]  ;;  %v995_v42 = vld [vmem:[%s3473_s5 + $0x20] sm:$0xff] }
  0x22   : > { %2636 = vmatpush3.msra.mxu0 %v377_v12  ;;  %2647 = vmatpush3.msra.mxu1 %v381_v13  ;;  %v690_v43 = vld [vmem:[%s361_s16] sm:$0xff]  ;;  %v1002_v44 = vld [vmem:[%s3473_s5 + $0x58] sm:$0xff]  ;;  %v1001_v46 = vld [vmem:[%s3473_s5 + $0x50] sm:$0xff]  ;;  %s2892_s16 = sshll.u32 %s2970_s27, 4  ;;  %s2893_s16 = int_to_ptr.vmem [resolvable:$false] %s2892_s16 }
  0x23   : > { %2637 = vmatprep.subr.mxu0 %v2966_v2  ;;  %2648 = vmatprep.subr.mxu1 %v2966_v2  ;;  %v1006_v45 = vld [vmem:[%s3473_s5 + $0x78] sm:$0xff]  ;;  %v1005_v47 = vld [vmem:[%s3473_s5 + $0x70] sm:$0xff]  ;;  %v1000_v48 = vld [vmem:[%s3473_s5 + $0x48] sm:$0xff]  ;;  %s2894_s17 = scalar_lea.vmem %s2893_s16, 256  ;;  %p2895_p1 = scmp.lt.s32.totalorder %s2383_s22, %s2893_s16 }
  0x24   : > { %2638 = vmatpush3.msra.mxu0 %v376_v14  ;;  %2649 = vmatpush3.msra.mxu1 %v380_v15  ;;  %v1004_v49 = vld [vmem:[%s3473_s5 + $0x68] sm:$0xff]  ;;  %v999_v50 = vld [vmem:[%s3473_s5 + $0x40] sm:$0xff]  ;;  %p2896_p2 = scmp.lt.s32.totalorder %s2894_s17, %s2888_s12 }
  0x25   : > { %2639 = vmatprep.subr.mxu0 %v2966_v2  ;;  %2650 = vmatprep.subr.mxu1 %v2966_v2  ;;  %v1003_v51 = vld [vmem:[%s3473_s5 + $0x60] sm:$0xff] }
  0x26   : > { %2640 = vmatpush3.msra.mxu0 %v375_v16  ;;  %2641 = vmatprep.mubr.msk.f32.mxu0 %vm2967_vm1, %v2966_v2  ;;  %p2897_p3 = por %p2896_p2, %p2895_p1 }
  0x27   : > { %2651 = vmatpush3.msra.mxu1 %v379_v17  ;;  %2642 = vmatmul.mubr.msk.f32.vlgmr.msra.gmra.mxu0 %vm383_vm0, %v366_v9 }
  0x28   : > { %2652 = vmatprep.mubr.msk.f32.mxu1 %vm2967_vm1, %v2966_v2  ;;  %2655 = vmatprep.subr.mxu0 %v2966_v2  ;;  %p2898_p5 = pnand %p2897_p3, %p2891_p0 }
  0x29   : > { %2666 = vmatprep.subr.mxu1 %v2966_v2  ;;  %2653 = vmatmul.mubr.msk.f32.vlgmr.msra.gmra.mxu1 %vm383_vm0, %v366_v9 }
  0x2a   : > { %2656 = vmatpush3.msra.mxu0 %v694_v18  ;;  %2667 = vmatpush3.msra.mxu1 %v698_v19 }
  0x2b   : > { %2657 = vmatprep.subr.mxu0 %v2966_v2  ;;  %2668 = vmatprep.subr.mxu1 %v2966_v2 }
  0x2c   : > { %2658 = vmatpush3.msra.mxu0 %v693_v20  ;;  %2669 = vmatpush3.msra.mxu1 %v697_v21  ;;  %v2968_v21 = vmov -inf  }
  0x2d   : > { %2659 = vmatprep.subr.mxu0 %v2966_v2  ;;  %2670 = vmatprep.subr.mxu1 %v2966_v2  ;;  %677 = vst.msk [vmem:[#allocation3] sm:$0xff] %vm676_vm3, %v2968_v21  ;;  %678 = vst.msk [vmem:[#allocation3 + $0x8] sm:$0xff] %vm676_vm3, %v2968_v21 }
  0x2e   : > { %2660 = vmatpush3.msra.mxu0 %v692_v22  ;;  %2671 = vmatpush3.msra.mxu1 %v696_v23  ;;  %679 = vst.msk [vmem:[#allocation3 + $0x10] sm:$0xff] %vm676_vm3, %v2968_v21  ;;  %680 = vst.msk [vmem:[#allocation3 + $0x18] sm:$0xff] %vm676_vm3, %v2968_v21 }
  0x2f   : > { %2661 = vmatprep.subr.mxu0 %v2966_v2  ;;  %2672 = vmatprep.subr.mxu1 %v2966_v2 }
  0x30   : > { %2662 = vmatpush3.msra.mxu0 %v691_v24  ;;  %2663 = vmatprep.mubr.msk.f32.mxu0 %vm2967_vm1, %v2966_v2 }
  0x31   : > { %2673 = vmatpush3.msra.mxu1 %v695_v25  ;;  %2674 = vmatprep.mubr.msk.f32.mxu1 %vm2967_vm1, %v2966_v2 }
  0x32   : > { %2664 = vmatmul.mubr.msk.f32.vlgmr.msra.gmra.mxu0 %vm383_vm0, %v689_v26  ;;  %2675 = vmatmul.mubr.msk.f32.vlgmr.msra.gmra.mxu1 %vm383_vm0, %v689_v26 }
  0x33   : > { %2677 = vmatprep.subr.mxu0 %v2966_v2  ;;  %2688 = vmatprep.subr.mxu1 %v2966_v2 }
  0x34   : > { %2678 = vmatpush3.msra.mxu0 %v702_v27  ;;  %2689 = vmatpush3.msra.mxu1 %v706_v28 }
  0x35   : > { %2679 = vmatprep.subr.mxu0 %v2966_v2  ;;  %2690 = vmatprep.subr.mxu1 %v2966_v2 }
  0x36   : > { %2680 = vmatpush3.msra.mxu0 %v701_v29  ;;  %2691 = vmatpush3.msra.mxu1 %v705_v30 }
  0x37   : > { %2681 = vmatprep.subr.mxu0 %v2966_v2  ;;  %2692 = vmatprep.subr.mxu1 %v2966_v2 }
  0x38   : > { %2682 = vmatpush3.msra.mxu0 %v700_v31  ;;  %2693 = vmatpush3.msra.mxu1 %v704_v32 }
  0x39   : > { %2683 = vmatprep.subr.mxu0 %v2966_v2  ;;  %2694 = vmatprep.subr.mxu1 %v2966_v2 }
  0x3a   : > { %2684 = vmatpush3.msra.mxu0 %v699_v33  ;;  %2685 = vmatprep.mubr.msk.f32.mxu0 %vm2967_vm1, %v2966_v2 }
  0x3b   : > { %2695 = vmatpush3.msra.mxu1 %v703_v34  ;;  %2696 = vmatprep.mubr.msk.f32.mxu1 %vm2967_vm1, %v2966_v2  ;;  %v2969_v34 = vmov 0  }
  0x3c   : > { %2686 = vmatmul.mubr.msk.f32.vlgmr.msra.gmra.mxu0 %vm383_vm0, %v689_v26  ;;  %2697 = vmatmul.mubr.msk.f32.vlgmr.msra.gmra.mxu1 %vm383_vm0, %v689_v26 }
  0x3d   : > { %2699 = vmatprep.subr.mxu0 %v2966_v2  ;;  %2710 = vmatprep.subr.mxu1 %v2966_v2 }
  0x3e   : > { %2707 = vmatprep.mubr.msk.f32.mxu0 %vm2967_vm1, %v2966_v2  ;;  %2718 = vmatprep.mubr.msk.f32.mxu1 %vm2967_vm1, %v2966_v2 }
  0x3f   : > { %2700 = vmatpush3.msra.mxu0 %v994_v35  ;;  %2711 = vmatpush3.msra.mxu1 %v998_v36  ;;  %v1599_v35 = vld [vmem:[#allocation3] sm:$0xff] }
  0x40   : > { %2701 = vmatprep.subr.mxu0 %v2966_v2  ;;  %2712 = vmatprep.subr.mxu1 %v2966_v2 }
  0x41   : > { %2702 = vmatpush3.msra.mxu0 %v993_v37  ;;  %2713 = vmatpush3.msra.mxu1 %v997_v38  ;;  %v1600_v38 = vld [vmem:[#allocation3 + $0x8] sm:$0xff] }
  0x42   : > { %2703 = vmatprep.subr.mxu0 %v2966_v2  ;;  %2714 = vmatprep.subr.mxu1 %v2966_v2 }
  0x43   : > { %2704 = vmatpush3.msra.mxu0 %v992_v39  ;;  %2715 = vmatpush3.msra.mxu1 %v996_v40 }
  0x44   : > { %2705 = vmatprep.subr.mxu0 %v2966_v2  ;;  %2716 = vmatprep.subr.mxu1 %v2966_v2 }
  0x45   : > { %2706 = vmatpush3.msra.mxu0 %v991_v41  ;;  %2717 = vmatpush3.msra.mxu1 %v995_v42 }
  0x46   : > { %2708 = vmatmul.mubr.msk.f32.vlgmr.msra.gmra.mxu0 %vm383_vm0, %v690_v43  ;;  %2721 = vmatprep.subr.mxu0 %v2966_v2 }
  0x47   : > { %2732 = vmatprep.subr.mxu1 %v2966_v2  ;;  %2719 = vmatmul.mubr.msk.f32.vlgmr.msra.gmra.mxu1 %vm383_vm0, %v690_v43 }
  0x48   : > { %2729 = vmatprep.mubr.msk.f32.mxu0 %vm2967_vm1, %v2966_v2  ;;  %2740 = vmatprep.mubr.msk.f32.mxu1 %vm2967_vm1, %v2966_v2 }
  0x49   : > { %2722 = vmatpush3.msra.mxu0 %v1002_v44  ;;  %2733 = vmatpush3.msra.mxu1 %v1006_v45 }
  0x4a   : > { %2723 = vmatprep.subr.mxu0 %v2966_v2  ;;  %2734 = vmatprep.subr.mxu1 %v2966_v2 }
  0x4b   : > { %2724 = vmatpush3.msra.mxu0 %v1001_v46  ;;  %2735 = vmatpush3.msra.mxu1 %v1005_v47  ;;  %v1602_v46 = vld [vmem:[#allocation3 + $0x18] sm:$0xff] }
  0x4c   : > { %2725 = vmatprep.subr.mxu0 %v2966_v2  ;;  %2736 = vmatprep.subr.mxu1 %v2966_v2 }
  0x4d   : > { %2726 = vmatpush3.msra.mxu0 %v1000_v48  ;;  %2737 = vmatpush3.msra.mxu1 %v1004_v49 }
  0x4e   : > { %2727 = vmatprep.subr.mxu0 %v2966_v2  ;;  %2738 = vmatprep.subr.mxu1 %v2966_v2 }
  0x4f   : > { %2728 = vmatpush3.msra.mxu0 %v999_v50  ;;  %2739 = vmatpush3.msra.mxu1 %v1003_v51 }
  0x50   : > { %2730 = vmatmul.mubr.msk.f32.vlgmr.msra.gmra.mxu0 %vm383_vm0, %v690_v43  ;;  %2741 = vmatmul.mubr.msk.f32.vlgmr.msra.gmra.mxu1 %vm383_vm0, %v690_v43  ;;  %v1601_v43 = vld [vmem:[#allocation3 + $0x10] sm:$0xff] }
  0x51   : > { %2743 = vmatprep.subr.mxu0 %v2966_v2  ;;  %2748 = vmatprep.subr.mxu1 %v2966_v2 }
  0x52   : > { %2745 = vmatprep.mubr.msk.f32.mxu0 %vm2967_vm1, %v2966_v2  ;;  %2750 = vmatprep.mubr.msk.f32.mxu1 %vm2967_vm1, %v2966_v2 }
  0x53   : > { %2862 = vset.pattern.permute.xlu0 %v2969_v34  ;;  %2863 = vset.pattern.permute.xlu1 %v2969_v34 }
  0xdd   : > { %v453_v52 = vpop.f32.mrf.mxu0 }
  0xde   : > { %v667_v53 = vmul.f32 0.35355338, %v453_v52 }
  0xdf   : > { %v2621_v54 = vpop.f32.mrf.mxu0  ;;  %v523_v55 = vpop.f32.mrf.mxu1 }
  0xe0   : > { %672 = vst.msk [vmem:[#allocation2] sm:$0xff] %vm671_vm2, %v667_v53  ;;  %v668_v56 = vmul.f32 0.35355338, %v523_v55 }
  0xe1   : > { %v2632_v57 = vpop.f32.mrf.mxu1 }
  0xe2   : > { %673 = vst.msk [vmem:[#allocation2 + $0x8] sm:$0xff] %vm671_vm2, %v668_v56 }
  0xe7   : > { %v593_v58 = vpop.f32.mrf.mxu0  ;;  %v1290_v5 = vld [vmem:[#allocation2] sm:$0xff] }
  0xe8   : > { %v669_v59 = vmul.f32 0.35355338, %v593_v58 }
  0xe9   : > { %v2643_v60 = vpop.f32.mrf.mxu0  ;;  %v663_v61 = vpop.f32.mrf.mxu1  ;;  %v1291_v6 = vld [vmem:[#allocation2 + $0x8] sm:$0xff] }
  0xea   : > { %674 = vst.msk [vmem:[#allocation2 + $0x10] sm:$0xff] %vm671_vm2, %v669_v59  ;;  %v670_v62 = vmul.f32 0.35355338, %v663_v61 }
  0xeb   : > { %v2654_v63 = vpop.f32.mrf.mxu1 }
  0xec   : > { %675 = vst.msk [vmem:[#allocation2 + $0x18] sm:$0xff] %vm671_vm2, %v670_v62 }
  0xf1   : > { %v1292_v11 = vld [vmem:[#allocation2 + $0x10] sm:$0xff] }
  0xf2   : > { %v777_v0 = vpop.f32.mrf.mxu0  ;;  %v847_v1 = vpop.f32.mrf.mxu1 }
  0xf3   : > { %2744 = vmatpush3.xpose.msk.msra.mxu0 %vm671_vm2, %v777_v0  ;;  %2749 = vmatpush3.xpose.msk.msra.mxu1 %vm671_vm2, %v847_v1  ;;  %v1293_v12 = vld [vmem:[#allocation2 + $0x18] sm:$0xff] }
  0xf4   : > { %v2665_v3 = vpop.f32.mrf.mxu0  ;;  %v2676_v4 = vpop.f32.mrf.mxu1  ;;  %2753 = vmatprep.subr.mxu0 %v2966_v2  ;;  %2758 = vmatprep.subr.mxu1 %v2966_v2 }
  0xf6   : > { %2746 = vmatmul.mubr.msk.f32.vlgmr.msra.gmra.mxu0 %vm671_vm2, %v1290_v5  ;;  %2751 = vmatmul.mubr.msk.f32.vlgmr.msra.gmra.mxu1 %vm671_vm2, %v1291_v6 }
  0xf7   : > { %2755 = vmatprep.mubr.msk.f32.mxu0 %vm2967_vm1, %v2966_v2  ;;  %2760 = vmatprep.mubr.msk.f32.mxu1 %vm2967_vm1, %v2966_v2 }
  0xfc   : > { %v917_v7 = vpop.f32.mrf.mxu0  ;;  %v987_v8 = vpop.f32.mrf.mxu1 }
  0xfd   : > { %2754 = vmatpush3.xpose.msk.msra.mxu0 %vm671_vm2, %v917_v7  ;;  %2759 = vmatpush3.xpose.msk.msra.mxu1 %vm671_vm2, %v987_v8 }
  0xfe   : > { %v2687_v9 = vpop.f32.mrf.mxu0  ;;  %v2698_v10 = vpop.f32.mrf.mxu1  ;;  %2763 = vmatprep.subr.mxu0 %v2966_v2  ;;  %2768 = vmatprep.subr.mxu1 %v2966_v2 }
 0x100   : > { %2756 = vmatmul.mubr.msk.f32.vlgmr.msra.gmra.mxu0 %vm671_vm2, %v1292_v11  ;;  %2761 = vmatmul.mubr.msk.f32.vlgmr.msra.gmra.mxu1 %vm671_vm2, %v1293_v12 }
 0x101   : > { %2765 = vmatprep.mubr.msk.f32.mxu0 %vm2967_vm1, %v2966_v2  ;;  %2770 = vmatprep.mubr.msk.f32.mxu1 %vm2967_vm1, %v2966_v2 }
 0x106   : > { %v1076_v13 = vpop.f32.mrf.mxu0 }
 0x107   : > { %2764 = vmatpush3.msra.mxu0 %v1076_v13  ;;  %v1146_v14 = vpop.f32.mrf.mxu1 }
 0x108   : > { %v2709_v15 = vpop.f32.mrf.mxu0  ;;  %2769 = vmatpush3.msra.mxu1 %v1146_v14  ;;  %2773 = vmatprep.subr.mxu0 %v2966_v2 }
 0x109   : > { %v2720_v16 = vpop.f32.mrf.mxu1  ;;  %2778 = vmatprep.subr.mxu1 %v2966_v2 }
 0x10a   : > { %v1663_v16 = vld [vmem:[#allocation4] sm:$0xff] }
 0x110   : > { %v3350_v17 = vpop.f32.mrf.mxu0  ;;  %v3352_v18 = vpop.f32.mrf.mxu1 }
 0x112   : > { %v2731_v19 = vpop.f32.mrf.mxu0  ;;  %v2742_v20 = vpop.f32.mrf.mxu1 }
 0x113   : > { %v1664_v19 = vld [vmem:[#allocation4 + $0x8] sm:$0xff] }
 0x1b6   : > { %v1367_v22 = vpop.f32.mrf.mxu0  ;;  %v1443_v23 = vpop.f32.mrf.mxu1 }
 0x1b7   : > { %v1603_v24 = vsel %vm671_vm2, %v1367_v22, -inf  ;;  %v1606_v27 = vsel %vm671_vm2, %v1443_v23, -inf }
 0x1b8   : > { %v2752_v25 = vpop.f32.mrf.mxu1  ;;  %1604 = vmax.xlane.f32.xlu0 %v1603_v24  ;;  %v2747_v26 = vpop.f32.mrf.mxu0  ;;  %v1665_v24 = vld [vmem:[#allocation4 + $0x10] sm:$0xff] }
 0x1bc   : > { %1607 = vmax.xlane.f32.xlu0 %v1606_v27  ;;  %v1666_v27 = vld [vmem:[#allocation4 + $0x18] sm:$0xff] }
 0x1c0   : > { %v1519_v28 = vpop.f32.mrf.mxu0  ;;  %v1595_v29 = vpop.f32.mrf.mxu1 }
 0x1c1   : > { %v1609_v30 = vsel %vm671_vm2, %v1519_v28, -inf  ;;  %v1612_v33 = vsel %vm671_vm2, %v1595_v29, -inf }
 0x1c2   : > { %v2762_v31 = vpop.f32.mrf.mxu1  ;;  %1610 = vmax.xlane.f32.xlu1 %v1609_v30  ;;  %v2757_v32 = vpop.f32.mrf.mxu0 }
 0x1c6   : > { %1613 = vmax.xlane.f32.xlu1 %v1612_v33 }
 0x241   : > { %v1605_v36 = vpop.xlane.xlu0 %1604 }
 0x242   : > { %v1615_v37 = vmax.f32 %v1599_v35, %v1605_v36 }
 0x244   : > { %v1619_v39 = vsub.f32 %v1599_v35, %v1615_v37  ;;  %2020 = vst.msk [vmem:[#allocation3] sm:$0xff] %vm676_vm3, %v1615_v37  ;;  %1633 = vperm.xlu0 %2862, %v1615_v37   ;;  %v2063_v35 = vld [vmem:[%s3474_s6] sm:$0xff] }
 0x245   : > { %v1608_v40 = vpop.xlane.xlu0 %1607 }
 0x246   : > { %v1616_v41 = vmax.f32 %v1600_v38, %v1608_v40  ;;  %v1623_v8 = vmul.f32 1.442695, %v1619_v39 }
 0x248   : > { %v1620_v42 = vsub.f32 %v1600_v38, %v1616_v41  ;;  %2021 = vst.msk [vmem:[#allocation3 + $0x8] sm:$0xff] %vm676_vm3, %v1616_v41  ;;  %1638 = vperm.xlu1 %2863, %v1616_v41   ;;  %v2064_v38 = vld [vmem:[%s3474_s6 + $0x8] sm:$0xff] }
 0x24a   : > { %v1625_v5 = vmul.f32 1.442695, %v1620_v42  ;;  %v1984_v42 = vld [vmem:[#allocation5] sm:$0xff] }
 0x24b   : > { %v1611_v44 = vpop.xlane.xlu1 %1610 }
 0x24c   : > { %v1617_v45 = vmax.f32 %v1601_v43, %v1611_v44 }
 0x24e   : > { %v1621_v47 = vsub.f32 %v1601_v43, %v1617_v45  ;;  %2022 = vst.msk [vmem:[#allocation3 + $0x10] sm:$0xff] %vm676_vm3, %v1617_v45  ;;  %1643 = vperm.xlu1 %2863, %v1617_v45   ;;  %v1985_v45 = vld [vmem:[#allocation5 + $0x8] sm:$0xff] }
 0x24f   : > { %v1614_v48 = vpop.xlane.xlu1 %1613 }
 0x250   : > { %v1618_v49 = vmax.f32 %v1602_v46, %v1614_v48  ;;  %v1627_v10 = vmul.f32 1.442695, %v1621_v47 }
 0x252   : > { %v1622_v50 = vsub.f32 %v1602_v46, %v1618_v49  ;;  %2023 = vst.msk [vmem:[#allocation3 + $0x18] sm:$0xff] %vm676_vm3, %v1618_v49  ;;  %1648 = vperm.xlu1 %2863, %v1618_v49  }
 0x254   : > { %v1629_v11 = vmul.f32 1.442695, %v1622_v50 }
 0x2bf   : > { %v1634_v51 = vpop.permute.xlu0 %1633 }
 0x2c0   : > { %v1651_v52 = vsub.f32 %v1367_v22, %v1634_v51 }
 0x2c2   : > { %v1655_v53 = vmul.f32 1.442695, %v1651_v52 }
 0x2c3   : > { %v1639_v54 = vpop.permute.xlu1 %1638 }
 0x2c4   : > { %2864 = vpow2.f32 %v1655_v53  ;;  %v1652_v55 = vsub.f32 %v1443_v23, %v1639_v54  ;;  %v1986_v54 = vld [vmem:[#allocation5 + $0x10] sm:$0xff] }
 0x2c6   : > { %v1657_v56 = vmul.f32 1.442695, %v1652_v55 }
 0x2c8   : > { %2866 = vpow2.f32 %v1657_v56 }
 0x2c9   : > { %v1644_v57 = vpop.permute.xlu1 %1643 }
 0x2ca   : > { %v1653_v58 = vsub.f32 %v1519_v28, %v1644_v57  ;;  %v1987_v57 = vld [vmem:[#allocation5 + $0x18] sm:$0xff] }
 0x2cc   : > { %v1659_v59 = vmul.f32 1.442695, %v1653_v58 }
 0x2cd   : > { %v1649_v60 = vpop.permute.xlu1 %1648 }
 0x2ce   : > { %2868 = vpow2.f32 %v1659_v59  ;;  %v1654_v61 = vsub.f32 %v1595_v29, %v1649_v60 }
 0x2d0   : > { %v1661_v62 = vmul.f32 1.442695, %v1654_v61 }
 0x2d1   : > { %v2865_v63 = vpop.eup %2864 }
 0x2d2   : > { %2870 = vpow2.f32 %v1661_v62  ;;  %2766 = vmatmul.mubr.msk.f32.vlgmr.msra.gmra.mxu0 %vm671_vm2, %v2865_v63  ;;  %v1671_v0 = vsel %vm671_vm2, %v2865_v63, 0.0 }
 0x2d3   : > { %2774 = vmatpush3.msra.mxu0 %v3350_v17  ;;  %1672 = vadd.xlane.f32.xlu1 %v1671_v0  ;;  %2872 = vpow2.f32 %v1625_v5 }
 0x2d4   : > { %2775 = vmatprep.mubr.msk.f32.mxu0 %vm2967_vm1, %v2966_v2  ;;  %2783 = vmatprep.subr.mxu0 %v2966_v2  ;;  %2874 = vpow2.f32 %v1623_v8 }
 0x2d5   : > { %v2867_v1 = vpop.eup %2866  ;;  %2876 = vpow2.f32 %v1627_v10  ;;  %v2066_v10 = vld [vmem:[%s3474_s6 + $0x18] sm:$0xff] }
 0x2d6   : > { %2771 = vmatmul.mubr.msk.f32.vlgmr.msra.gmra.mxu1 %vm671_vm2, %v2867_v1  ;;  %v1674_v3 = vsel %vm671_vm2, %v2867_v1, 0.0  ;;  %2878 = vpow2.f32 %v1629_v11 }
 0x2d7   : > { %2779 = vmatpush3.msra.mxu1 %v3352_v18  ;;  %1675 = vadd.xlane.f32.xlu0 %v1674_v3 }
 0x2d8   : > { %2780 = vmatprep.mubr.msk.f32.mxu1 %vm2967_vm1, %v2966_v2  ;;  %2788 = vmatprep.subr.mxu1 %v2966_v2 }
 0x2db   : > { %v2869_v4 = vpop.eup %2868 }
 0x2dc   : > { %2776 = vmatmul.mubr.msk.f32.vlgmr.msra.gmra.mxu0 %vm671_vm2, %v2869_v4  ;;  %v1677_v6 = vsel %vm671_vm2, %v2869_v4, 0.0 }
 0x2dd   : > { %1678 = vadd.xlane.f32.xlu1 %v1677_v6  ;;  %2785 = vmatprep.mubr.msk.f32.mxu0 %vm2967_vm1, %v2966_v2  ;;  %v2065_v6 = vld [vmem:[%s3474_s6 + $0x10] sm:$0xff] }
 0x2de   : > { %2784 = vmatpush3.msra.mxu0 %v2063_v35 }
 0x2df   : > { %v2871_v7 = vpop.eup %2870  ;;  %2793 = vmatprep.subr.mxu0 %v2966_v2 }
 0x2e0   : > { %2781 = vmatmul.mubr.msk.f32.vlgmr.msra.gmra.mxu1 %vm671_vm2, %v2871_v7  ;;  %v1680_v9 = vsel %vm671_vm2, %v2871_v7, 0.0  ;;  %v2873_v12 = vpop.eup %2872 }
 0x2e1   : > { %1681 = vadd.xlane.f32.xlu1 %v1680_v9  ;;  %2790 = vmatprep.mubr.msk.f32.mxu1 %vm2967_vm1, %v2966_v2  ;;  %v2875_v13 = vpop.eup %2874  ;;  %v1668_v21 = vmul.f32 %v2873_v12, %v1664_v19 }
 0x2e2   : > { %v2877_v14 = vpop.eup %2876  ;;  %v1667_v17 = vmul.f32 %v2875_v13, %v1663_v16  ;;  %2789 = vmatpush3.msra.mxu1 %v2064_v38 }
 0x2e3   : > { %v2879_v15 = vpop.eup %2878  ;;  %v1669_v25 = vmul.f32 %v2877_v14, %v1665_v24  ;;  %2798 = vmatprep.subr.mxu1 %v2966_v2 }
 0x2e4   : > { %v1670_v30 = vmul.f32 %v2879_v15, %v1666_v27 }
 0x2ed   : > { %1995 = vperm.xlu0 %2862, %v2873_v12  }
 0x2f2   : > { %1990 = vperm.xlu1 %2863, %v2875_v13  }
 0x2f6   : > { %2000 = vperm.xlu1 %2863, %v2877_v14  }
 0x2fa   : > { %2005 = vperm.xlu1 %2863, %v2879_v15  }
 0x35c   : > { %v1673_v18 = vpop.xlane.xlu1 %1672 }
 0x35d   : > { %v1683_v20 = vadd.f32 %v1673_v18, %v1667_v17 }
 0x35f   : > { %1688 = vst.msk [vmem:[#allocation4] sm:$0xff] %vm676_vm3, %v1683_v20 }
 0x360   : > { %v1676_v22 = vpop.xlane.xlu0 %1675 }
 0x361   : > { %v1684_v23 = vadd.f32 %v1676_v22, %v1668_v21 }
 0x363   : > { %1689 = vst.msk [vmem:[#allocation4 + $0x8] sm:$0xff] %vm676_vm3, %v1684_v23 }
 0x366   : > { %v1679_v26 = vpop.xlane.xlu1 %1678  ;;  %v2027_v28 = vld [vmem:[#allocation4] sm:$0xff] }
 0x367   : > { %v1685_v29 = vadd.f32 %v1679_v26, %v1669_v25  ;;  %2880 = vrcp.f32 %v2027_v28 }
 0x368   : > { %v1996_v46 = vpop.permute.xlu0 %1995 }
 0x369   : > { %1690 = vst.msk [vmem:[#allocation4 + $0x10] sm:$0xff] %vm676_vm3, %v1685_v29  ;;  %v2009_v50 = vmul.f32 %v1996_v46, %v1985_v45 }
 0x36a   : > { %v1682_v31 = vpop.xlane.xlu1 %1681  ;;  %v2028_v32 = vld [vmem:[#allocation4 + $0x8] sm:$0xff] }
 0x36b   : > { %v1686_v33 = vadd.f32 %v1682_v31, %v1670_v30  ;;  %2882 = vrcp.f32 %v2028_v32 }
 0x36d   : > { %1691 = vst.msk [vmem:[#allocation4 + $0x18] sm:$0xff] %vm676_vm3, %v1686_v33 }
 0x36e   : > { %v1991_v43 = vpop.permute.xlu1 %1990 }
 0x36f   : > { %v2008_v44 = vmul.f32 %v1991_v43, %v1984_v42 }
 0x370   : > { %v2029_v34 = vld [vmem:[#allocation4 + $0x10] sm:$0xff] }
 0x371   : > { %2884 = vrcp.f32 %v2029_v34 }
 0x372   : > { %v2001_v51 = vpop.permute.xlu1 %2000 }
 0x373   : > { %v2010_v56 = vmul.f32 %v2001_v51, %v1986_v54 }
 0x374   : > { %v2881_v36 = vpop.eup %2880  ;;  %v2030_v37 = vld [vmem:[#allocation4 + $0x18] sm:$0xff] }
 0x375   : > { %2041 = vperm.xlu1 %2863, %v2881_v36   ;;  %2886 = vrcp.f32 %v2030_v37 }
 0x376   : > { %v2006_v58 = vpop.permute.xlu1 %2005 }
 0x377   : > { %v2011_v62 = vmul.f32 %v2006_v58, %v1987_v57 }
 0x378   : > { %v2883_v39 = vpop.eup %2882 }
 0x379   : > { %2046 = vperm.xlu0 %2862, %v2883_v39  }
 0x37e   : > { %v2885_v40 = vpop.eup %2884 }
 0x37f   : > { %2051 = vperm.xlu1 %2863, %v2885_v40  }
 0x382   : > { %v2887_v41 = vpop.eup %2886 }
 0x383   : > { %2056 = vperm.xlu0 %2862, %v2887_v41  }
 0x392   : > { %v1761_v47 = vpop.f32.mrf.mxu0 }
 0x393   : > { %v2012_v48 = vadd.f32 %v2008_v44, %v1761_v47 }
 0x394   : > { %v2767_v49 = vpop.f32.mrf.mxu0 }
 0x395   : > { %2016 = vst.msk [vmem:[#allocation5] sm:$0xff] %vm671_vm2, %v2012_v48 }
 0x396   : > { %v1834_v52 = vpop.f32.mrf.mxu1 }
 0x397   : > { %v2013_v53 = vadd.f32 %v2009_v50, %v1834_v52 }
 0x398   : > { %v2772_v55 = vpop.f32.mrf.mxu1 }
 0x399   : > { %2017 = vst.msk [vmem:[#allocation5 + $0x8] sm:$0xff] %vm671_vm2, %v2013_v53 }
 0x39c   : > { %v1907_v59 = vpop.f32.mrf.mxu0  ;;  %v2035_v4 = vld [vmem:[#allocation5] sm:$0xff] }
 0x39d   : > { %v2014_v60 = vadd.f32 %v2010_v56, %v1907_v59 }
 0x39e   : > { %v2777_v61 = vpop.f32.mrf.mxu0 }
 0x39f   : > { %2018 = vst.msk [vmem:[#allocation5 + $0x10] sm:$0xff] %vm671_vm2, %v2014_v60 }
 0x3a0   : > { %v1980_v63 = vpop.f32.mrf.mxu1  ;;  %v2036_v7 = vld [vmem:[#allocation5 + $0x8] sm:$0xff] }
 0x3a1   : > { %v2015_v0 = vadd.f32 %v2011_v62, %v1980_v63 }
 0x3a2   : > { %v2782_v1 = vpop.f32.mrf.mxu1 }
 0x3a3   : > { %2019 = vst.msk [vmem:[#allocation5 + $0x18] sm:$0xff] %vm671_vm2, %v2015_v0 }
 0x3a6   : > { %v2037_v12 = vld [vmem:[#allocation5 + $0x10] sm:$0xff] }
 0x3aa   : > { %v2038_v15 = vld [vmem:[#allocation5 + $0x18] sm:$0xff] }
 0x3f0   : > { %v2042_v3 = vpop.permute.xlu1 %2041 }
 0x3f1   : > { %v2059_v5 = vmul.f32 %v2042_v3, %v2035_v4 }
 0x3f3   : > { %2786 = vmatmul.mubr.msk.f32.vlgmr.msra.gmra.mxu0 %vm671_vm2, %v2059_v5 }
 0x3f4   : > { %v2047_v8 = vpop.permute.xlu0 %2046  ;;  %2794 = vmatpush3.msra.mxu0 %v2065_v6  ;;  %2795 = vmatprep.mubr.msk.f32.mxu0 %vm2967_vm1, %v2966_v2 }
 0x3f5   : > { %v2060_v9 = vmul.f32 %v2047_v8, %v2036_v7 }
 0x3f7   : > { %2791 = vmatmul.mubr.msk.f32.vlgmr.msra.gmra.mxu1 %vm671_vm2, %v2060_v9 }
 0x3f8   : > { %2799 = vmatpush3.msra.mxu1 %v2066_v10  ;;  %2800 = vmatprep.mubr.msk.f32.mxu1 %vm2967_vm1, %v2966_v2 }
 0x3fa   : > { %v2052_v11 = vpop.permute.xlu1 %2051 }
 0x3fb   : > { %v2061_v13 = vmul.f32 %v2052_v11, %v2037_v12 }
 0x3fd   : > { %2796 = vmatmul.mubr.msk.f32.vlgmr.msra.gmra.mxu0 %vm671_vm2, %v2061_v13 }
 0x3fe   : > { %v2057_v14 = vpop.permute.xlu0 %2056 }
 0x3ff   : > { %v2062_v16 = vmul.f32 %v2057_v14, %v2038_v15 }
 0x401   : > { %2801 = vmatmul.mubr.msk.f32.vlgmr.msra.gmra.mxu1 %vm671_vm2, %v2062_v16 }
 0x4b3   : > { %v2136_v17 = vpop.f32.mrf.mxu0 }
 0x4b4   : > { %v2359_v22 = vsel %vm383_vm0, %v2136_v17, 0.0 }
 0x4b5   : > { %v2787_v18 = vpop.f32.mrf.mxu0 }
 0x4b7   : > { %v2209_v19 = vpop.f32.mrf.mxu1 }
 0x4b8   : > { %v2360_v21 = vsel %vm383_vm0, %v2209_v19, 0.0 }
 0x4b9   : > { %v2792_v20 = vpop.f32.mrf.mxu1  ;;  %v2361_v24 = vadd.f32 %v2360_v21, %v2359_v22 }
 0x4bd   : > { %v2282_v2 = vpop.f32.mrf.mxu0 }
 0x4be   : > { %v2362_v23 = vsel %vm383_vm0, %v2282_v2, 0.0 }
 0x4bf   : > { %v2797_v25 = vpop.f32.mrf.mxu0  ;;  %v2363_v26 = vadd.f32 %v2362_v23, %v2361_v24 }
 0x4c1   : > { %v2355_v27 = vpop.f32.mrf.mxu1 }
 0x4c2   : > { %v2364_v28 = vsel %vm383_vm0, %v2355_v27, 0.0 }
 0x4c3   : > { %v2365_v29 = vadd.f32 %v2364_v28, %v2363_v26  ;;  %v2802_v30 = vpop.f32.mrf.mxu1 }
 0x4c5   : > { %2366 = vst.msk [vmem:[%s340_s21] sm:$0xff] %vm383_vm0, %v2365_v29 }
 0x4c6   : > { %2901 = shalt.err (!%p2898_p5)
}
 0x4c7   : > { %s2902_s18 = scalar_lea.hbm %s2380_s8, 128  ;;  %s2906_s15 = scalar_lea.hbm %s3475_s7, 256 }
 0x4c8   : > { %p2903_p6 = scmp.ne.s32.totalorder %s2380_s8, %s2902_s18  ;;  %p2907_p10 = scmp.lt.s32.totalorder %s2380_s8, %s3475_s7 }
 0x4c9   : > { %p2908_p11 = scmp.lt.s32.totalorder %s2906_s15, %s2902_s18 }
 0x4ca   : > { %p2904_p7 = pnand %p2903_p6, %p3051_p4 }
 0x4cb   : > { %p2909_p12 = por %p2908_p11, %p2907_p10 }
 0x4cc   : > { %p2905_p9 = pneg %p2904_p7 }
 0x4ce   : > { %p2910_p13 = pnand %p2909_p12, %p2905_p9 }
 0x4d0   : > { %2913 = shalt.err (!%p2910_p13)
}
 0x4d1   : > { %2803 = dma.vmem_to_hbm [thread:$0]  (%p3051_p4), %s2383_s22, 128, %s2380_s8, %s2368_s10  }
 0x4d2 PF: > { %p2809_p0 = scmp.ge.s32.totalorder %s2964_s29, 2  ;;  %s2394_s30 = sand.u32 1, %s2944_s24  }
 0x4d3   : > { %s2395_s12 = scalar_lea.sflag [#allocation7], %s2394_s30 }
 0x4d4   : > { %p2806_p1 = pnand %p2809_p0, %p3058_p8 }
 0x4d6   : > { %p2807_p2 = pneg %p2806_p1 }
 0x4d8   : > { %2939 = dma.done.wait (%p2807_p2), %s2395_s12, 128  }
 0x4d9   : > { %2941 = vsyncadd (%p2807_p2), %s2395_s12, 4294967168  ;;  %s20_s29 = sadd.s32 1, %s2964_s29   ;;  %s3478_s24 = smov %s2948_s25 }
 0x4da   : > { %p17_p3 = scmp.ge.s32.totalorder %s20_s29, 4   ;;  %s3479_s25 = smov %s2952_s26 }
 0x4db   : > { %s3480_s26 = smov %s3064_s14  ;;  %s3481_s27 = smov %s2960_s28 }
 0x4dc   : > { %s3482_s28 = smov %s3484_s9  ;;  %19 = sbr.rel (!%p17_p3) target bundleno = 4 (0x4), region = 97 }
 0x4e1   :  { %2400 = vsyncpa [#allocation7], 1 }
 0x4e2   :  { %2402 = vsyncpa [#allocation7 + $0x1], 1 }

// kernel: tpu_custom_call.1
= control target key start
LH: loop header
LB: loop body
LE: loop exit
PB: predicated region body
PF: predicated region fallthrough
CT: control target
= control target key end

     0   :  { %12 = vsyncpa [#allocation7], 0  ;;  %s3468_s0 = inlined_call_operand.vmem [shape: f32[2,8,32], index: 0, kind: input, shape index: {}]   ;;  %s3469_s1 = inlined_call_operand.vmem [shape: f32[2,8,32], index: 1, kind: input, shape index: {}]   ;;  %s3470_s2 = inlined_call_operand.vmem [shape: f32[2,8,32], index: 2, kind: input, shape index: {}]   ;;  %s3471_s3 = inlined_call_operand.vmem [shape: f32[4,32,8], index: 3, kind: input, shape index: {}]   ;;  %s3472_s4 = inlined_call_operand.vmem [shape: f32[4,32,8], index: 4, kind: input, shape index: {}]   ;;  %s3473_s5 = inlined_call_operand.vmem [shape: f32[4,32,8], index: 5, kind: input, shape index: {}]   ;;  %s3474_s6 = inlined_call_operand.vmem [shape: f32[4,8,32], index: 6, kind: input, shape index: {}]   ;;  %s3475_s7 = inlined_call_operand.hbm [shape: f32[2,8,32], index: 7, kind: output, shape index: {}]  }
   0x1   :  { %14 = vsyncpa [#allocation7 + $0x1], 0  ;;  %s3011_s24 = smov 0   ;;  %s3013_s25 = smov 0  }
   0x2   :  { %s3015_s26 = smov 0   ;;  %s3017_s27 = smov 0  }
   0x3   :  { %s3019_s28 = smov 0   ;;  %s3021_s29 = smov 0  }
   0x4 LB: > { %s2486_s30 = sadd.s32 4294967295, %s2964_s29   ;;  %s2487_s8 = sadd.s32 4294967294, %s2964_s29   ;;  %s2964_s29 = sphi %s3021_s29, %s20_s29   ;;  %s2960_s28 = sphi %s3019_s28, %s3482_s28   ;;  %s2956_s27 = sphi %s3017_s27, %s3481_s27   ;;  %s2952_s26 = sphi %s3015_s26, %s3480_s26   ;;  %s2948_s25 = sphi %s3013_s25, %s3479_s25   ;;  %s2944_s24 = sphi %s3011_s24, %s3478_s24  }
   0x5   : > { %s39_s9 = sadd.s32 1, %s2960_s28  ;;  %s216_s10 = sadd.s32 1, %s2952_s26 }
   0x6   : > { %p41_p0 = scmp.ge.s32.totalorder %s39_s9, 2  ;;  %p226_p1 = scmp.ne.s32.totalorder %s2952_s26, %s2948_s25 }
   0x7   : > { %p227_p2 = scmp.eq.s32.totalorder %s2486_s30, 1  ;;  %p232_p3 = scmp.ne.s32.totalorder %s2948_s25, %s2944_s24 }
   0x8   : > { %s3484_s9 = smov (%p41_p0, %s39_s9), 0  ;;  %p233_p5 = scmp.eq.s32.totalorder %s2487_s8, 1 }
   0x9   : > { %p3051_p4 = por %p227_p2, %p226_p1  ;;  %s211_s12 = ssub.s32 %s2960_s28, %s3484_s9 }
   0xa   : > { %p2490_p6 = scmp.ge.s32.totalorder %s2964_s29, 1  ;;  %p214_p7 = scmp.eq.s32.totalorder %s211_s12, 0 }
   0xb   : > { %p3058_p8 = por %p233_p5, %p232_p3  ;;  %p293_p9 = scmp.lt.s32.totalorder %s2964_s29, 3 }
   0xc   : > { %s3064_s14 = scalar_select %p214_p7, %s2952_s26, %s216_s10  }
   0xd   : > { %p294_p10 = pnand %p2490_p6, %p293_p9 }
   0xe   : > { %p341_p11 = scmp.lt.s32.totalorder (!%p294_p10), %s2956_s27, 1  ;;  %s338_s19 = sand.u32 (!%p294_p10), 1, %s2948_s25  }
   0xf   : > { %297 = sbr.rel (%p294_p10) target bundleno = 1234 (0x4d2), region = 48  ;;  %s2368_s10 = scalar_lea.sflag (!%p294_p10), [#allocation7], %s338_s19 }
  0x14   : > { %v370_v0 = vld [vmem:[%s3471_s3 + $0x18] sm:$0xff]  ;;  %v2966_v2 = vmov 0.0   ;;  %v369_v3 = vld [vmem:[%s3471_s3 + $0x10] sm:$0xff]  ;;  %s342_s23 = scalar_select %p341_p11, %s2956_s27, 1  ;;  %v368_v5 = vld [vmem:[%s3471_s3 + $0x8] sm:$0xff]  ;;  %vm383_vm0 = vcmask 261120  }
  0x15   : > { %v374_v1 = vld [vmem:[%s3471_s3 + $0x38] sm:$0xff]  ;;  %2611 = vmatprep.subr.mxu0 %v2966_v2  ;;  %2622 = vmatprep.subr.mxu1 %v2966_v2  ;;  %v373_v4 = vld [vmem:[%s3471_s3 + $0x30] sm:$0xff]  ;;  %v372_v6 = vld [vmem:[%s3471_s3 + $0x28] sm:$0xff]  ;;  %vm2967_vm1 = vmmov 0   ;;  %vm671_vm2 = vcmask 64512   ;;  %vm676_vm3 = vcmask 7168  }
  0x16   : > { %2612 = vmatpush3.msra.mxu0 %v370_v0  ;;  %2623 = vmatpush3.msra.mxu1 %v374_v1  ;;  %s3090_s15 = sshll.u32 %s342_s23, 3  ;;  %v367_v7 = vld [vmem:[%s3471_s3] sm:$0xff]  ;;  %v378_v10 = vld [vmem:[%s3471_s3 + $0x58] sm:$0xff]  ;;  %v377_v12 = vld [vmem:[%s3471_s3 + $0x50] sm:$0xff]  ;;  %685 = vst.msk [vmem:[#allocation5] sm:$0xff] %vm671_vm2, %v2966_v2 }
  0x17   : > { %2613 = vmatprep.subr.mxu0 %v2966_v2  ;;  %2624 = vmatprep.subr.mxu1 %v2966_v2  ;;  %s347_s20 = scalar_lea.vmem %s3468_s0, %s3090_s15  ;;  %v371_v8 = vld [vmem:[%s3471_s3 + $0x20] sm:$0xff]  ;;  %v382_v11 = vld [vmem:[%s3471_s3 + $0x78] sm:$0xff]  ;;  %v381_v13 = vld [vmem:[%s3471_s3 + $0x70] sm:$0xff]  ;;  %s354_s17 = scalar_lea.vmem %s3469_s1, %s3090_s15  ;;  %686 = vst.msk [vmem:[#allocation5 + $0x8] sm:$0xff] %vm671_vm2, %v2966_v2 }
  0x18   : > { %2614 = vmatpush3.msra.mxu0 %v369_v3  ;;  %2625 = vmatpush3.msra.mxu1 %v373_v4  ;;  %v366_v9 = vld [vmem:[%s347_s20] sm:$0xff]  ;;  %v376_v14 = vld [vmem:[%s3471_s3 + $0x48] sm:$0xff]  ;;  %v694_v18 = vld [vmem:[%s3472_s4 + $0x18] sm:$0xff]  ;;  %687 = vst.msk [vmem:[#allocation5 + $0x10] sm:$0xff] %vm671_vm2, %v2966_v2  ;;  %s361_s16 = scalar_lea.vmem %s3470_s2, %s3090_s15  ;;  %s2491_s20 = sshll.u32 %s338_s19, 3 }
  0x19   : > { %2615 = vmatprep.subr.mxu0 %v2966_v2  ;;  %2626 = vmatprep.subr.mxu1 %v2966_v2  ;;  %v380_v15 = vld [vmem:[%s3471_s3 + $0x68] sm:$0xff]  ;;  %v375_v16 = vld [vmem:[%s3471_s3 + $0x40] sm:$0xff]  ;;  %v698_v19 = vld [vmem:[%s3472_s4 + $0x38] sm:$0xff]  ;;  %688 = vst.msk [vmem:[#allocation5 + $0x18] sm:$0xff] %vm671_vm2, %v2966_v2  ;;  %s2524_s15 = sshll.u32 %s2956_s27, 7  ;;  %s340_s21 = scalar_lea.vmem [#allocation6], %s2491_s20 }
  0x1a   : > { %2616 = vmatpush3.msra.mxu0 %v368_v5  ;;  %2627 = vmatpush3.msra.mxu1 %v372_v6  ;;  %v379_v17 = vld [vmem:[%s3471_s3 + $0x60] sm:$0xff]  ;;  %v693_v20 = vld [vmem:[%s3472_s4 + $0x10] sm:$0xff]  ;;  %v692_v22 = vld [vmem:[%s3472_s4 + $0x8] sm:$0xff]  ;;  %681 = vst.msk [vmem:[#allocation4] sm:$0xff] %vm676_vm3, %v2966_v2  ;;  %s2382_s22 = sshll.u32 %s340_s21, 4  ;;  %s2380_s8 = scalar_lea.hbm %s3475_s7, %s2524_s15  ;;  %s2383_s22 = int_to_ptr.vmem [resolvable:$true] %s2382_s22 }
  0x1b   : > { %2617 = vmatprep.subr.mxu0 %v2966_v2  ;;  %2628 = vmatprep.subr.mxu1 %v2966_v2  ;;  %v697_v21 = vld [vmem:[%s3472_s4 + $0x30] sm:$0xff]  ;;  %v696_v23 = vld [vmem:[%s3472_s4 + $0x28] sm:$0xff]  ;;  %v691_v24 = vld [vmem:[%s3472_s4] sm:$0xff]  ;;  %682 = vst.msk [vmem:[#allocation4 + $0x8] sm:$0xff] %vm676_vm3, %v2966_v2  ;;  %s2888_s12 = scalar_lea.vmem %s2383_s22, 128  ;;  %s2970_s27 = smov [#allocation6]  }
  0x1c   : > { %2618 = vmatpush3.msra.mxu0 %v367_v7  ;;  %2619 = vmatprep.mubr.msk.f32.mxu0 %vm2967_vm1, %v2966_v2  ;;  %v695_v25 = vld [vmem:[%s3472_s4 + $0x20] sm:$0xff]  ;;  %v702_v27 = vld [vmem:[%s3472_s4 + $0x58] sm:$0xff]  ;;  %v701_v29 = vld [vmem:[%s3472_s4 + $0x50] sm:$0xff]  ;;  %683 = vst.msk [vmem:[#allocation4 + $0x10] sm:$0xff] %vm676_vm3, %v2966_v2  ;;  %p2889_p12 = scmp.ne.s32.totalorder %s2383_s22, %s2888_s12 }
  0x1d   : > { %2629 = vmatpush3.msra.mxu1 %v371_v8  ;;  %2620 = vmatmul.mubr.msk.f32.vlgmr.msra.gmra.mxu0 %vm383_vm0, %v366_v9  ;;  %v689_v26 = vld [vmem:[%s354_s17] sm:$0xff]  ;;  %v706_v28 = vld [vmem:[%s3472_s4 + $0x78] sm:$0xff]  ;;  %v705_v30 = vld [vmem:[%s3472_s4 + $0x70] sm:$0xff]  ;;  %684 = vst.msk [vmem:[#allocation4 + $0x18] sm:$0xff] %vm676_vm3, %v2966_v2 }
  0x1e   : > { %2630 = vmatprep.mubr.msk.f32.mxu1 %vm2967_vm1, %v2966_v2  ;;  %2633 = vmatprep.subr.mxu0 %v2966_v2  ;;  %v700_v31 = vld [vmem:[%s3472_s4 + $0x48] sm:$0xff]  ;;  %v699_v33 = vld [vmem:[%s3472_s4 + $0x40] sm:$0xff]  ;;  %v994_v35 = vld [vmem:[%s3473_s5 + $0x18] sm:$0xff]  ;;  %p2890_p13 = pnand %p2889_p12, %p3051_p4 }
  0x1f   : > { %2644 = vmatprep.subr.mxu1 %v2966_v2  ;;  %2631 = vmatmul.mubr.msk.f32.vlgmr.msra.gmra.mxu1 %vm383_vm0, %v366_v9  ;;  %v704_v32 = vld [vmem:[%s3472_s4 + $0x68] sm:$0xff]  ;;  %v703_v34 = vld [vmem:[%s3472_s4 + $0x60] sm:$0xff]  ;;  %v998_v36 = vld [vmem:[%s3473_s5 + $0x38] sm:$0xff] }
  0x20   : > { %2634 = vmatpush3.msra.mxu0 %v378_v10  ;;  %2645 = vmatpush3.msra.mxu1 %v382_v11  ;;  %v993_v37 = vld [vmem:[%s3473_s5 + $0x10] sm:$0xff]  ;;  %v992_v39 = vld [vmem:[%s3473_s5 + $0x8] sm:$0xff]  ;;  %v991_v41 = vld [vmem:[%s3473_s5] sm:$0xff]  ;;  %p2891_p0 = pneg %p2890_p13 }
  0x21   : > { %2635 = vmatprep.subr.mxu0 %v2966_v2  ;;  %2646 = vmatprep.subr.mxu1 %v2966_v2  ;;  %v997_v38 = vld [vmem:[%s3473_s5 + $0x30] sm:$0xff]  ;;  %v996_v40 = vld [vmem:[%s3473_s5 + $0x28] sm:$0xff]  ;;  %v995_v42 = vld [vmem:[%s3473_s5 + $0x20] sm:$0xff] }
  0x22   : > { %2636 = vmatpush3.msra.mxu0 %v377_v12  ;;  %2647 = vmatpush3.msra.mxu1 %v381_v13  ;;  %v690_v43 = vld [vmem:[%s361_s16] sm:$0xff]  ;;  %v1002_v44 = vld [vmem:[%s3473_s5 + $0x58] sm:$0xff]  ;;  %v1001_v46 = vld [vmem:[%s3473_s5 + $0x50] sm:$0xff]  ;;  %s2892_s16 = sshll.u32 %s2970_s27, 4  ;;  %s2893_s16 = int_to_ptr.vmem [resolvable:$false] %s2892_s16 }
  0x23   : > { %2637 = vmatprep.subr.mxu0 %v2966_v2  ;;  %2648 = vmatprep.subr.mxu1 %v2966_v2  ;;  %v1006_v45 = vld [vmem:[%s3473_s5 + $0x78] sm:$0xff]  ;;  %v1005_v47 = vld [vmem:[%s3473_s5 + $0x70] sm:$0xff]  ;;  %v1000_v48 = vld [vmem:[%s3473_s5 + $0x48] sm:$0xff]  ;;  %s2894_s17 = scalar_lea.vmem %s2893_s16, 256  ;;  %p2895_p1 = scmp.lt.s32.totalorder %s2383_s22, %s2893_s16 }
  0x24   : > { %2638 = vmatpush3.msra.mxu0 %v376_v14  ;;  %2649 = vmatpush3.msra.mxu1 %v380_v15  ;;  %v1004_v49 = vld [vmem:[%s3473_s5 + $0x68] sm:$0xff]  ;;  %v999_v50 = vld [vmem:[%s3473_s5 + $0x40] sm:$0xff]  ;;  %p2896_p2 = scmp.lt.s32.totalorder %s2894_s17, %s2888_s12 }
  0x25   : > { %2639 = vmatprep.subr.mxu0 %v2966_v2  ;;  %2650 = vmatprep.subr.mxu1 %v2966_v2  ;;  %v1003_v51 = vld [vmem:[%s3473_s5 + $0x60] sm:$0xff] }
  0x26   : > { %2640 = vmatpush3.msra.mxu0 %v375_v16  ;;  %2641 = vmatprep.mubr.msk.f32.mxu0 %vm2967_vm1, %v2966_v2  ;;  %p2897_p3 = por %p2896_p2, %p2895_p1 }
  0x27   : > { %2651 = vmatpush3.msra.mxu1 %v379_v17  ;;  %2642 = vmatmul.mubr.msk.f32.vlgmr.msra.gmra.mxu0 %vm383_vm0, %v366_v9 }
  0x28   : > { %2652 = vmatprep.mubr.msk.f32.mxu1 %vm2967_vm1, %v2966_v2  ;;  %2655 = vmatprep.subr.mxu0 %v2966_v2  ;;  %p2898_p5 = pnand %p2897_p3, %p2891_p0 }
  0x29   : > { %2666 = vmatprep.subr.mxu1 %v2966_v2  ;;  %2653 = vmatmul.mubr.msk.f32.vlgmr.msra.gmra.mxu1 %vm383_vm0, %v366_v9 }
  0x2a   : > { %2656 = vmatpush3.msra.mxu0 %v694_v18  ;;  %2667 = vmatpush3.msra.mxu1 %v698_v19 }
  0x2b   : > { %2657 = vmatprep.subr.mxu0 %v2966_v2  ;;  %2668 = vmatprep.subr.mxu1 %v2966_v2 }
  0x2c   : > { %2658 = vmatpush3.msra.mxu0 %v693_v20  ;;  %2669 = vmatpush3.msra.mxu1 %v697_v21  ;;  %v2968_v21 = vmov -inf  }
  0x2d   : > { %2659 = vmatprep.subr.mxu0 %v2966_v2  ;;  %2670 = vmatprep.subr.mxu1 %v2966_v2  ;;  %677 = vst.msk [vmem:[#allocation3] sm:$0xff] %vm676_vm3, %v2968_v21  ;;  %678 = vst.msk [vmem:[#allocation3 + $0x8] sm:$0xff] %vm676_vm3, %v2968_v21 }
  0x2e   : > { %2660 = vmatpush3.msra.mxu0 %v692_v22  ;;  %2671 = vmatpush3.msra.mxu1 %v696_v23  ;;  %679 = vst.msk [vmem:[#allocation3 + $0x10] sm:$0xff] %vm676_vm3, %v2968_v21  ;;  %680 = vst.msk [vmem:[#allocation3 + $0x18] sm:$0xff] %vm676_vm3, %v2968_v21 }
  0x2f   : > { %2661 = vmatprep.subr.mxu0 %v2966_v2  ;;  %2672 = vmatprep.subr.mxu1 %v2966_v2 }
  0x30   : > { %2662 = vmatpush3.msra.mxu0 %v691_v24  ;;  %2663 = vmatprep.mubr.msk.f32.mxu0 %vm2967_vm1, %v2966_v2 }
  0x31   : > { %2673 = vmatpush3.msra.mxu1 %v695_v25  ;;  %2674 = vmatprep.mubr.msk.f32.mxu1 %vm2967_vm1, %v2966_v2 }
  0x32   : > { %2664 = vmatmul.mubr.msk.f32.vlgmr.msra.gmra.mxu0 %vm383_vm0, %v689_v26  ;;  %2675 = vmatmul.mubr.msk.f32.vlgmr.msra.gmra.mxu1 %vm383_vm0, %v689_v26 }
  0x33   : > { %2677 = vmatprep.subr.mxu0 %v2966_v2  ;;  %2688 = vmatprep.subr.mxu1 %v2966_v2 }
  0x34   : > { %2678 = vmatpush3.msra.mxu0 %v702_v27  ;;  %2689 = vmatpush3.msra.mxu1 %v706_v28 }
  0x35   : > { %2679 = vmatprep.subr.mxu0 %v2966_v2  ;;  %2690 = vmatprep.subr.mxu1 %v2966_v2 }
  0x36   : > { %2680 = vmatpush3.msra.mxu0 %v701_v29  ;;  %2691 = vmatpush3.msra.mxu1 %v705_v30 }
  0x37   : > { %2681 = vmatprep.subr.mxu0 %v2966_v2  ;;  %2692 = vmatprep.subr.mxu1 %v2966_v2 }
  0x38   : > { %2682 = vmatpush3.msra.mxu0 %v700_v31  ;;  %2693 = vmatpush3.msra.mxu1 %v704_v32 }
  0x39   : > { %2683 = vmatprep.subr.mxu0 %v2966_v2  ;;  %2694 = vmatprep.subr.mxu1 %v2966_v2 }
  0x3a   : > { %2684 = vmatpush3.msra.mxu0 %v699_v33  ;;  %2685 = vmatprep.mubr.msk.f32.mxu0 %vm2967_vm1, %v2966_v2 }
  0x3b   : > { %2695 = vmatpush3.msra.mxu1 %v703_v34  ;;  %2696 = vmatprep.mubr.msk.f32.mxu1 %vm2967_vm1, %v2966_v2  ;;  %v2969_v34 = vmov 0  }
  0x3c   : > { %2686 = vmatmul.mubr.msk.f32.vlgmr.msra.gmra.mxu0 %vm383_vm0, %v689_v26  ;;  %2697 = vmatmul.mubr.msk.f32.vlgmr.msra.gmra.mxu1 %vm383_vm0, %v689_v26 }
  0x3d   : > { %2699 = vmatprep.subr.mxu0 %v2966_v2  ;;  %2710 = vmatprep.subr.mxu1 %v2966_v2 }
  0x3e   : > { %2707 = vmatprep.mubr.msk.f32.mxu0 %vm2967_vm1, %v2966_v2  ;;  %2718 = vmatprep.mubr.msk.f32.mxu1 %vm2967_vm1, %v2966_v2 }
  0x3f   : > { %2700 = vmatpush3.msra.mxu0 %v994_v35  ;;  %2711 = vmatpush3.msra.mxu1 %v998_v36  ;;  %v1599_v35 = vld [vmem:[#allocation3] sm:$0xff] }
  0x40   : > { %2701 = vmatprep.subr.mxu0 %v2966_v2  ;;  %2712 = vmatprep.subr.mxu1 %v2966_v2 }
  0x41   : > { %2702 = vmatpush3.msra.mxu0 %v993_v37  ;;  %2713 = vmatpush3.msra.mxu1 %v997_v38  ;;  %v1600_v38 = vld [vmem:[#allocation3 + $0x8] sm:$0xff] }
  0x42   : > { %2703 = vmatprep.subr.mxu0 %v2966_v2  ;;  %2714 = vmatprep.subr.mxu1 %v2966_v2 }
  0x43   : > { %2704 = vmatpush3.msra.mxu0 %v992_v39  ;;  %2715 = vmatpush3.msra.mxu1 %v996_v40 }
  0x44   : > { %2705 = vmatprep.subr.mxu0 %v2966_v2  ;;  %2716 = vmatprep.subr.mxu1 %v2966_v2 }
  0x45   : > { %2706 = vmatpush3.msra.mxu0 %v991_v41  ;;  %2717 = vmatpush3.msra.mxu1 %v995_v42 }
  0x46   : > { %2708 = vmatmul.mubr.msk.f32.vlgmr.msra.gmra.mxu0 %vm383_vm0, %v690_v43  ;;  %2721 = vmatprep.subr.mxu0 %v2966_v2 }
  0x47   : > { %2732 = vmatprep.subr.mxu1 %v2966_v2  ;;  %2719 = vmatmul.mubr.msk.f32.vlgmr.msra.gmra.mxu1 %vm383_vm0, %v690_v43 }
  0x48   : > { %2729 = vmatprep.mubr.msk.f32.mxu0 %vm2967_vm1, %v2966_v2  ;;  %2740 = vmatprep.mubr.msk.f32.mxu1 %vm2967_vm1, %v2966_v2 }
  0x49   : > { %2722 = vmatpush3.msra.mxu0 %v1002_v44  ;;  %2733 = vmatpush3.msra.mxu1 %v1006_v45 }
  0x4a   : > { %2723 = vmatprep.subr.mxu0 %v2966_v2  ;;  %2734 = vmatprep.subr.mxu1 %v2966_v2 }
  0x4b   : > { %2724 = vmatpush3.msra.mxu0 %v1001_v46  ;;  %2735 = vmatpush3.msra.mxu1 %v1005_v47  ;;  %v1602_v46 = vld [vmem:[#allocation3 + $0x18] sm:$0xff] }
  0x4c   : > { %2725 = vmatprep.subr.mxu0 %v2966_v2  ;;  %2736 = vmatprep.subr.mxu1 %v2966_v2 }
  0x4d   : > { %2726 = vmatpush3.msra.mxu0 %v1000_v48  ;;  %2737 = vmatpush3.msra.mxu1 %v1004_v49 }
  0x4e   : > { %2727 = vmatprep.subr.mxu0 %v2966_v2  ;;  %2738 = vmatprep.subr.mxu1 %v2966_v2 }
  0x4f   : > { %2728 = vmatpush3.msra.mxu0 %v999_v50  ;;  %2739 = vmatpush3.msra.mxu1 %v1003_v51 }
  0x50   : > { %2730 = vmatmul.mubr.msk.f32.vlgmr.msra.gmra.mxu0 %vm383_vm0, %v690_v43  ;;  %2741 = vmatmul.mubr.msk.f32.vlgmr.msra.gmra.mxu1 %vm383_vm0, %v690_v43  ;;  %v1601_v43 = vld [vmem:[#allocation3 + $0x10] sm:$0xff] }
  0x51   : > { %2743 = vmatprep.subr.mxu0 %v2966_v2  ;;  %2748 = vmatprep.subr.mxu1 %v2966_v2 }
  0x52   : > { %2745 = vmatprep.mubr.msk.f32.mxu0 %vm2967_vm1, %v2966_v2  ;;  %2750 = vmatprep.mubr.msk.f32.mxu1 %vm2967_vm1, %v2966_v2 }
  0x53   : > { %2862 = vset.pattern.permute.xlu0 %v2969_v34  ;;  %2863 = vset.pattern.permute.xlu1 %v2969_v34 }
  0xdd   : > { %v453_v52 = vpop.f32.mrf.mxu0 }
  0xde   : > { %v667_v53 = vmul.f32 0.35355338, %v453_v52 }
  0xdf   : > { %v2621_v54 = vpop.f32.mrf.mxu0  ;;  %v523_v55 = vpop.f32.mrf.mxu1 }
  0xe0   : > { %672 = vst.msk [vmem:[#allocation2] sm:$0xff] %vm671_vm2, %v667_v53  ;;  %v668_v56 = vmul.f32 0.35355338, %v523_v55 }
  0xe1   : > { %v2632_v57 = vpop.f32.mrf.mxu1 }
  0xe2   : > { %673 = vst.msk [vmem:[#allocation2 + $0x8] sm:$0xff] %vm671_vm2, %v668_v56 }
  0xe7   : > { %v593_v58 = vpop.f32.mrf.mxu0  ;;  %v1290_v5 = vld [vmem:[#allocation2] sm:$0xff] }
  0xe8   : > { %v669_v59 = vmul.f32 0.35355338, %v593_v58 }
  0xe9   : > { %v2643_v60 = vpop.f32.mrf.mxu0  ;;  %v663_v61 = vpop.f32.mrf.mxu1  ;;  %v1291_v6 = vld [vmem:[#allocation2 + $0x8] sm:$0xff] }
  0xea   : > { %674 = vst.msk [vmem:[#allocation2 + $0x10] sm:$0xff] %vm671_vm2, %v669_v59  ;;  %v670_v62 = vmul.f32 0.35355338, %v663_v61 }
  0xeb   : > { %v2654_v63 = vpop.f32.mrf.mxu1 }
  0xec   : > { %675 = vst.msk [vmem:[#allocation2 + $0x18] sm:$0xff] %vm671_vm2, %v670_v62 }
  0xf1   : > { %v1292_v11 = vld [vmem:[#allocation2 + $0x10] sm:$0xff] }
  0xf2   : > { %v777_v0 = vpop.f32.mrf.mxu0  ;;  %v847_v1 = vpop.f32.mrf.mxu1 }
  0xf3   : > { %2744 = vmatpush3.xpose.msk.msra.mxu0 %vm671_vm2, %v777_v0  ;;  %2749 = vmatpush3.xpose.msk.msra.mxu1 %vm671_vm2, %v847_v1  ;;  %v1293_v12 = vld [vmem:[#allocation2 + $0x18] sm:$0xff] }
  0xf4   : > { %v2665_v3 = vpop.f32.mrf.mxu0  ;;  %v2676_v4 = vpop.f32.mrf.mxu1  ;;  %2753 = vmatprep.subr.mxu0 %v2966_v2  ;;  %2758 = vmatprep.subr.mxu1 %v2966_v2 }
  0xf6   : > { %2746 = vmatmul.mubr.msk.f32.vlgmr.msra.gmra.mxu0 %vm671_vm2, %v1290_v5  ;;  %2751 = vmatmul.mubr.msk.f32.vlgmr.msra.gmra.mxu1 %vm671_vm2, %v1291_v6 }
  0xf7   : > { %2755 = vmatprep.mubr.msk.f32.mxu0 %vm2967_vm1, %v2966_v2  ;;  %2760 = vmatprep.mubr.msk.f32.mxu1 %vm2967_vm1, %v2966_v2 }
  0xfc   : > { %v917_v7 = vpop.f32.mrf.mxu0  ;;  %v987_v8 = vpop.f32.mrf.mxu1 }
  0xfd   : > { %2754 = vmatpush3.xpose.msk.msra.mxu0 %vm671_vm2, %v917_v7  ;;  %2759 = vmatpush3.xpose.msk.msra.mxu1 %vm671_vm2, %v987_v8 }
  0xfe   : > { %v2687_v9 = vpop.f32.mrf.mxu0  ;;  %v2698_v10 = vpop.f32.mrf.mxu1  ;;  %2763 = vmatprep.subr.mxu0 %v2966_v2  ;;  %2768 = vmatprep.subr.mxu1 %v2966_v2 }
 0x100   : > { %2756 = vmatmul.mubr.msk.f32.vlgmr.msra.gmra.mxu0 %vm671_vm2, %v1292_v11  ;;  %2761 = vmatmul.mubr.msk.f32.vlgmr.msra.gmra.mxu1 %vm671_vm2, %v1293_v12 }
 0x101   : > { %2765 = vmatprep.mubr.msk.f32.mxu0 %vm2967_vm1, %v2966_v2  ;;  %2770 = vmatprep.mubr.msk.f32.mxu1 %vm2967_vm1, %v2966_v2 }
 0x106   : > { %v1076_v13 = vpop.f32.mrf.mxu0 }
 0x107   : > { %2764 = vmatpush3.msra.mxu0 %v1076_v13  ;;  %v1146_v14 = vpop.f32.mrf.mxu1 }
 0x108   : > { %v2709_v15 = vpop.f32.mrf.mxu0  ;;  %2769 = vmatpush3.msra.mxu1 %v1146_v14  ;;  %2773 = vmatprep.subr.mxu0 %v2966_v2 }
 0x109   : > { %v2720_v16 = vpop.f32.mrf.mxu1  ;;  %2778 = vmatprep.subr.mxu1 %v2966_v2 }
 0x10a   : > { %v1663_v16 = vld [vmem:[#allocation4] sm:$0xff] }
 0x110   : > { %v3350_v17 = vpop.f32.mrf.mxu0  ;;  %v3352_v18 = vpop.f32.mrf.mxu1 }
 0x112   : > { %v2731_v19 = vpop.f32.mrf.mxu0  ;;  %v2742_v20 = vpop.f32.mrf.mxu1 }
 0x113   : > { %v1664_v19 = vld [vmem:[#allocation4 + $0x8] sm:$0xff] }
 0x1b6   : > { %v1367_v22 = vpop.f32.mrf.mxu0  ;;  %v1443_v23 = vpop.f32.mrf.mxu1 }
 0x1b7   : > { %v1603_v24 = vsel %vm671_vm2, %v1367_v22, -inf  ;;  %v1606_v27 = vsel %vm671_vm2, %v1443_v23, -inf }
 0x1b8   : > { %v2752_v25 = vpop.f32.mrf.mxu1  ;;  %1604 = vmax.xlane.f32.xlu0 %v1603_v24  ;;  %v2747_v26 = vpop.f32.mrf.mxu0  ;;  %v1665_v24 = vld [vmem:[#allocation4 + $0x10] sm:$0xff] }
 0x1bc   : > { %1607 = vmax.xlane.f32.xlu0 %v1606_v27  ;;  %v1666_v27 = vld [vmem:[#allocation4 + $0x18] sm:$0xff] }
 0x1c0   : > { %v1519_v28 = vpop.f32.mrf.mxu0  ;;  %v1595_v29 = vpop.f32.mrf.mxu1 }
 0x1c1   : > { %v1609_v30 = vsel %vm671_vm2, %v1519_v28, -inf  ;;  %v1612_v33 = vsel %vm671_vm2, %v1595_v29, -inf }
 0x1c2   : > { %v2762_v31 = vpop.f32.mrf.mxu1  ;;  %1610 = vmax.xlane.f32.xlu1 %v1609_v30  ;;  %v2757_v32 = vpop.f32.mrf.mxu0 }
 0x1c6   : > { %1613 = vmax.xlane.f32.xlu1 %v1612_v33 }
 0x241   : > { %v1605_v36 = vpop.xlane.xlu0 %1604 }
 0x242   : > { %v1615_v37 = vmax.f32 %v1599_v35, %v1605_v36 }
 0x244   : > { %v1619_v39 = vsub.f32 %v1599_v35, %v1615_v37  ;;  %2020 = vst.msk [vmem:[#allocation3] sm:$0xff] %vm676_vm3, %v1615_v37  ;;  %1633 = vperm.xlu0 %2862, %v1615_v37   ;;  %v2063_v35 = vld [vmem:[%s3474_s6] sm:$0xff] }
 0x245   : > { %v1608_v40 = vpop.xlane.xlu0 %1607 }
 0x246   : > { %v1616_v41 = vmax.f32 %v1600_v38, %v1608_v40  ;;  %v1623_v8 = vmul.f32 1.442695, %v1619_v39 }
 0x248   : > { %v1620_v42 = vsub.f32 %v1600_v38, %v1616_v41  ;;  %2021 = vst.msk [vmem:[#allocation3 + $0x8] sm:$0xff] %vm676_vm3, %v1616_v41  ;;  %1638 = vperm.xlu1 %2863, %v1616_v41   ;;  %v2064_v38 = vld [vmem:[%s3474_s6 + $0x8] sm:$0xff] }
 0x24a   : > { %v1625_v5 = vmul.f32 1.442695, %v1620_v42  ;;  %v1984_v42 = vld [vmem:[#allocation5] sm:$0xff] }
 0x24b   : > { %v1611_v44 = vpop.xlane.xlu1 %1610 }
 0x24c   : > { %v1617_v45 = vmax.f32 %v1601_v43, %v1611_v44 }
 0x24e   : > { %v1621_v47 = vsub.f32 %v1601_v43, %v1617_v45  ;;  %2022 = vst.msk [vmem:[#allocation3 + $0x10] sm:$0xff] %vm676_vm3, %v1617_v45  ;;  %1643 = vperm.xlu1 %2863, %v1617_v45   ;;  %v1985_v45 = vld [vmem:[#allocation5 + $0x8] sm:$0xff] }
 0x24f   : > { %v1614_v48 = vpop.xlane.xlu1 %1613 }
 0x250   : > { %v1618_v49 = vmax.f32 %v1602_v46, %v1614_v48  ;;  %v1627_v10 = vmul.f32 1.442695, %v1621_v47 }
 0x252   : > { %v1622_v50 = vsub.f32 %v1602_v46, %v1618_v49  ;;  %2023 = vst.msk [vmem:[#allocation3 + $0x18] sm:$0xff] %vm676_vm3, %v1618_v49  ;;  %1648 = vperm.xlu1 %2863, %v1618_v49  }
 0x254   : > { %v1629_v11 = vmul.f32 1.442695, %v1622_v50 }
 0x2bf   : > { %v1634_v51 = vpop.permute.xlu0 %1633 }
 0x2c0   : > { %v1651_v52 = vsub.f32 %v1367_v22, %v1634_v51 }
 0x2c2   : > { %v1655_v53 = vmul.f32 1.442695, %v1651_v52 }
 0x2c3   : > { %v1639_v54 = vpop.permute.xlu1 %1638 }
 0x2c4   : > { %2864 = vpow2.f32 %v1655_v53  ;;  %v1652_v55 = vsub.f32 %v1443_v23, %v1639_v54  ;;  %v1986_v54 = vld [vmem:[#allocation5 + $0x10] sm:$0xff] }
 0x2c6   : > { %v1657_v56 = vmul.f32 1.442695, %v1652_v55 }
 0x2c8   : > { %2866 = vpow2.f32 %v1657_v56 }
 0x2c9   : > { %v1644_v57 = vpop.permute.xlu1 %1643 }
 0x2ca   : > { %v1653_v58 = vsub.f32 %v1519_v28, %v1644_v57  ;;  %v1987_v57 = vld [vmem:[#allocation5 + $0x18] sm:$0xff] }
 0x2cc   : > { %v1659_v59 = vmul.f32 1.442695, %v1653_v58 }
 0x2cd   : > { %v1649_v60 = vpop.permute.xlu1 %1648 }
 0x2ce   : > { %2868 = vpow2.f32 %v1659_v59  ;;  %v1654_v61 = vsub.f32 %v1595_v29, %v1649_v60 }
 0x2d0   : > { %v1661_v62 = vmul.f32 1.442695, %v1654_v61 }
 0x2d1   : > { %v2865_v63 = vpop.eup %2864 }
 0x2d2   : > { %2870 = vpow2.f32 %v1661_v62  ;;  %2766 = vmatmul.mubr.msk.f32.vlgmr.msra.gmra.mxu0 %vm671_vm2, %v2865_v63  ;;  %v1671_v0 = vsel %vm671_vm2, %v2865_v63, 0.0 }
 0x2d3   : > { %2774 = vmatpush3.msra.mxu0 %v3350_v17  ;;  %1672 = vadd.xlane.f32.xlu1 %v1671_v0  ;;  %2872 = vpow2.f32 %v1625_v5 }
 0x2d4   : > { %2775 = vmatprep.mubr.msk.f32.mxu0 %vm2967_vm1, %v2966_v2  ;;  %2783 = vmatprep.subr.mxu0 %v2966_v2  ;;  %2874 = vpow2.f32 %v1623_v8 }
 0x2d5   : > { %v2867_v1 = vpop.eup %2866  ;;  %2876 = vpow2.f32 %v1627_v10  ;;  %v2066_v10 = vld [vmem:[%s3474_s6 + $0x18] sm:$0xff] }
 0x2d6   : > { %2771 = vmatmul.mubr.msk.f32.vlgmr.msra.gmra.mxu1 %vm671_vm2, %v2867_v1  ;;  %v1674_v3 = vsel %vm671_vm2, %v2867_v1, 0.0  ;;  %2878 = vpow2.f32 %v1629_v11 }
 0x2d7   : > { %2779 = vmatpush3.msra.mxu1 %v3352_v18  ;;  %1675 = vadd.xlane.f32.xlu0 %v1674_v3 }
 0x2d8   : > { %2780 = vmatprep.mubr.msk.f32.mxu1 %vm2967_vm1, %v2966_v2  ;;  %2788 = vmatprep.subr.mxu1 %v2966_v2 }
 0x2db   : > { %v2869_v4 = vpop.eup %2868 }
 0x2dc   : > { %2776 = vmatmul.mubr.msk.f32.vlgmr.msra.gmra.mxu0 %vm671_vm2, %v2869_v4  ;;  %v1677_v6 = vsel %vm671_vm2, %v2869_v4, 0.0 }
 0x2dd   : > { %1678 = vadd.xlane.f32.xlu1 %v1677_v6  ;;  %2785 = vmatprep.mubr.msk.f32.mxu0 %vm2967_vm1, %v2966_v2  ;;  %v2065_v6 = vld [vmem:[%s3474_s6 + $0x10] sm:$0xff] }
 0x2de   : > { %2784 = vmatpush3.msra.mxu0 %v2063_v35 }
 0x2df   : > { %v2871_v7 = vpop.eup %2870  ;;  %2793 = vmatprep.subr.mxu0 %v2966_v2 }
 0x2e0   : > { %2781 = vmatmul.mubr.msk.f32.vlgmr.msra.gmra.mxu1 %vm671_vm2, %v2871_v7  ;;  %v1680_v9 = vsel %vm671_vm2, %v2871_v7, 0.0  ;;  %v2873_v12 = vpop.eup %2872 }
 0x2e1   : > { %1681 = vadd.xlane.f32.xlu1 %v1680_v9  ;;  %2790 = vmatprep.mubr.msk.f32.mxu1 %vm2967_vm1, %v2966_v2  ;;  %v2875_v13 = vpop.eup %2874  ;;  %v1668_v21 = vmul.f32 %v2873_v12, %v1664_v19 }
 0x2e2   : > { %v2877_v14 = vpop.eup %2876  ;;  %v1667_v17 = vmul.f32 %v2875_v13, %v1663_v16  ;;  %2789 = vmatpush3.msra.mxu1 %v2064_v38 }
 0x2e3   : > { %v2879_v15 = vpop.eup %2878  ;;  %v1669_v25 = vmul.f32 %v2877_v14, %v1665_v24  ;;  %2798 = vmatprep.subr.mxu1 %v2966_v2 }
 0x2e4   : > { %v1670_v30 = vmul.f32 %v2879_v15, %v1666_v27 }
 0x2ed   : > { %1995 = vperm.xlu0 %2862, %v2873_v12  }
 0x2f2   : > { %1990 = vperm.xlu1 %2863, %v2875_v13  }
 0x2f6   : > { %2000 = vperm.xlu1 %2863, %v2877_v14  }
 0x2fa   : > { %2005 = vperm.xlu1 %2863, %v2879_v15  }
 0x35c   : > { %v1673_v18 = vpop.xlane.xlu1 %1672 }
 0x35d   : > { %v1683_v20 = vadd.f32 %v1673_v18, %v1667_v17 }
 0x35f   : > { %1688 = vst.msk [vmem:[#allocation4] sm:$0xff] %vm676_vm3, %v1683_v20 }
 0x360   : > { %v1676_v22 = vpop.xlane.xlu0 %1675 }
 0x361   : > { %v1684_v23 = vadd.f32 %v1676_v22, %v1668_v21 }
 0x363   : > { %1689 = vst.msk [vmem:[#allocation4 + $0x8] sm:$0xff] %vm676_vm3, %v1684_v23 }
 0x366   : > { %v1679_v26 = vpop.xlane.xlu1 %1678  ;;  %v2027_v28 = vld [vmem:[#allocation4] sm:$0xff] }
 0x367   : > { %v1685_v29 = vadd.f32 %v1679_v26, %v1669_v25  ;;  %2880 = vrcp.f32 %v2027_v28 }
 0x368   : > { %v1996_v46 = vpop.permute.xlu0 %1995 }
 0x369   : > { %1690 = vst.msk [vmem:[#allocation4 + $0x10] sm:$0xff] %vm676_vm3, %v1685_v29  ;;  %v2009_v50 = vmul.f32 %v1996_v46, %v1985_v45 }
 0x36a   : > { %v1682_v31 = vpop.xlane.xlu1 %1681  ;;  %v2028_v32 = vld [vmem:[#allocation4 + $0x8] sm:$0xff] }
 0x36b   : > { %v1686_v33 = vadd.f32 %v1682_v31, %v1670_v30  ;;  %2882 = vrcp.f32 %v2028_v32 }
 0x36d   : > { %1691 = vst.msk [vmem:[#allocation4 + $0x18] sm:$0xff] %vm676_vm3, %v1686_v33 }
 0x36e   : > { %v1991_v43 = vpop.permute.xlu1 %1990 }
 0x36f   : > { %v2008_v44 = vmul.f32 %v1991_v43, %v1984_v42 }
 0x370   : > { %v2029_v34 = vld [vmem:[#allocation4 + $0x10] sm:$0xff] }
 0x371   : > { %2884 = vrcp.f32 %v2029_v34 }
 0x372   : > { %v2001_v51 = vpop.permute.xlu1 %2000 }
 0x373   : > { %v2010_v56 = vmul.f32 %v2001_v51, %v1986_v54 }
 0x374   : > { %v2881_v36 = vpop.eup %2880  ;;  %v2030_v37 = vld [vmem:[#allocation4 + $0x18] sm:$0xff] }
 0x375   : > { %2041 = vperm.xlu1 %2863, %v2881_v36   ;;  %2886 = vrcp.f32 %v2030_v37 }
 0x376   : > { %v2006_v58 = vpop.permute.xlu1 %2005 }
 0x377   : > { %v2011_v62 = vmul.f32 %v2006_v58, %v1987_v57 }
 0x378   : > { %v2883_v39 = vpop.eup %2882 }
 0x379   : > { %2046 = vperm.xlu0 %2862, %v2883_v39  }
 0x37e   : > { %v2885_v40 = vpop.eup %2884 }
 0x37f   : > { %2051 = vperm.xlu1 %2863, %v2885_v40  }
 0x382   : > { %v2887_v41 = vpop.eup %2886 }
 0x383   : > { %2056 = vperm.xlu0 %2862, %v2887_v41  }
 0x392   : > { %v1761_v47 = vpop.f32.mrf.mxu0 }
 0x393   : > { %v2012_v48 = vadd.f32 %v2008_v44, %v1761_v47 }
 0x394   : > { %v2767_v49 = vpop.f32.mrf.mxu0 }
 0x395   : > { %2016 = vst.msk [vmem:[#allocation5] sm:$0xff] %vm671_vm2, %v2012_v48 }
 0x396   : > { %v1834_v52 = vpop.f32.mrf.mxu1 }
 0x397   : > { %v2013_v53 = vadd.f32 %v2009_v50, %v1834_v52 }
 0x398   : > { %v2772_v55 = vpop.f32.mrf.mxu1 }
 0x399   : > { %2017 = vst.msk [vmem:[#allocation5 + $0x8] sm:$0xff] %vm671_vm2, %v2013_v53 }
 0x39c   : > { %v1907_v59 = vpop.f32.mrf.mxu0  ;;  %v2035_v4 = vld [vmem:[#allocation5] sm:$0xff] }
 0x39d   : > { %v2014_v60 = vadd.f32 %v2010_v56, %v1907_v59 }
 0x39e   : > { %v2777_v61 = vpop.f32.mrf.mxu0 }
 0x39f   : > { %2018 = vst.msk [vmem:[#allocation5 + $0x10] sm:$0xff] %vm671_vm2, %v2014_v60 }
 0x3a0   : > { %v1980_v63 = vpop.f32.mrf.mxu1  ;;  %v2036_v7 = vld [vmem:[#allocation5 + $0x8] sm:$0xff] }
 0x3a1   : > { %v2015_v0 = vadd.f32 %v2011_v62, %v1980_v63 }
 0x3a2   : > { %v2782_v1 = vpop.f32.mrf.mxu1 }
 0x3a3   : > { %2019 = vst.msk [vmem:[#allocation5 + $0x18] sm:$0xff] %vm671_vm2, %v2015_v0 }
 0x3a6   : > { %v2037_v12 = vld [vmem:[#allocation5 + $0x10] sm:$0xff] }
 0x3aa   : > { %v2038_v15 = vld [vmem:[#allocation5 + $0x18] sm:$0xff] }
 0x3f0   : > { %v2042_v3 = vpop.permute.xlu1 %2041 }
 0x3f1   : > { %v2059_v5 = vmul.f32 %v2042_v3, %v2035_v4 }
 0x3f3   : > { %2786 = vmatmul.mubr.msk.f32.vlgmr.msra.gmra.mxu0 %vm671_vm2, %v2059_v5 }
 0x3f4   : > { %v2047_v8 = vpop.permute.xlu0 %2046  ;;  %2794 = vmatpush3.msra.mxu0 %v2065_v6  ;;  %2795 = vmatprep.mubr.msk.f32.mxu0 %vm2967_vm1, %v2966_v2 }
 0x3f5   : > { %v2060_v9 = vmul.f32 %v2047_v8, %v2036_v7 }
 0x3f7   : > { %2791 = vmatmul.mubr.msk.f32.vlgmr.msra.gmra.mxu1 %vm671_vm2, %v2060_v9 }
 0x3f8   : > { %2799 = vmatpush3.msra.mxu1 %v2066_v10  ;;  %2800 = vmatprep.mubr.msk.f32.mxu1 %vm2967_vm1, %v2966_v2 }
 0x3fa   : > { %v2052_v11 = vpop.permute.xlu1 %2051 }
 0x3fb   : > { %v2061_v13 = vmul.f32 %v2052_v11, %v2037_v12 }
 0x3fd   : > { %2796 = vmatmul.mubr.msk.f32.vlgmr.msra.gmra.mxu0 %vm671_vm2, %v2061_v13 }
 0x3fe   : > { %v2057_v14 = vpop.permute.xlu0 %2056 }
 0x3ff   : > { %v2062_v16 = vmul.f32 %v2057_v14, %v2038_v15 }
 0x401   : > { %2801 = vmatmul.mubr.msk.f32.vlgmr.msra.gmra.mxu1 %vm671_vm2, %v2062_v16 }
 0x4b3   : > { %v2136_v17 = vpop.f32.mrf.mxu0 }
 0x4b4   : > { %v2359_v22 = vsel %vm383_vm0, %v2136_v17, 0.0 }
 0x4b5   : > { %v2787_v18 = vpop.f32.mrf.mxu0 }
 0x4b7   : > { %v2209_v19 = vpop.f32.mrf.mxu1 }
 0x4b8   : > { %v2360_v21 = vsel %vm383_vm0, %v2209_v19, 0.0 }
 0x4b9   : > { %v2792_v20 = vpop.f32.mrf.mxu1  ;;  %v2361_v24 = vadd.f32 %v2360_v21, %v2359_v22 }
 0x4bd   : > { %v2282_v2 = vpop.f32.mrf.mxu0 }
 0x4be   : > { %v2362_v23 = vsel %vm383_vm0, %v2282_v2, 0.0 }
 0x4bf   : > { %v2797_v25 = vpop.f32.mrf.mxu0  ;;  %v2363_v26 = vadd.f32 %v2362_v23, %v2361_v24 }
 0x4c1   : > { %v2355_v27 = vpop.f32.mrf.mxu1 }
 0x4c2   : > { %v2364_v28 = vsel %vm383_vm0, %v2355_v27, 0.0 }
 0x4c3   : > { %v2365_v29 = vadd.f32 %v2364_v28, %v2363_v26  ;;  %v2802_v30 = vpop.f32.mrf.mxu1 }
 0x4c5   : > { %2366 = vst.msk [vmem:[%s340_s21] sm:$0xff] %vm383_vm0, %v2365_v29 }
 0x4c6   : > { %2901 = shalt.err (!%p2898_p5)
}
 0x4c7   : > { %s2902_s18 = scalar_lea.hbm %s2380_s8, 128  ;;  %s2906_s15 = scalar_lea.hbm %s3475_s7, 256 }
 0x4c8   : > { %p2903_p6 = scmp.ne.s32.totalorder %s2380_s8, %s2902_s18  ;;  %p2907_p10 = scmp.lt.s32.totalorder %s2380_s8, %s3475_s7 }
 0x4c9   : > { %p2908_p11 = scmp.lt.s32.totalorder %s2906_s15, %s2902_s18 }
 0x4ca   : > { %p2904_p7 = pnand %p2903_p6, %p3051_p4 }
 0x4cb   : > { %p2909_p12 = por %p2908_p11, %p2907_p10 }
 0x4cc   : > { %p2905_p9 = pneg %p2904_p7 }
 0x4ce   : > { %p2910_p13 = pnand %p2909_p12, %p2905_p9 }
 0x4d0   : > { %2913 = shalt.err (!%p2910_p13)
}
 0x4d1   : > { %2803 = dma.vmem_to_hbm [thread:$0]  (%p3051_p4), %s2383_s22, 128, %s2380_s8, %s2368_s10  }
 0x4d2 PF: > { %p2809_p0 = scmp.ge.s32.totalorder %s2964_s29, 2  ;;  %s2394_s30 = sand.u32 1, %s2944_s24  }
 0x4d3   : > { %s2395_s12 = scalar_lea.sflag [#allocation7], %s2394_s30 }
 0x4d4   : > { %p2806_p1 = pnand %p2809_p0, %p3058_p8 }
 0x4d6   : > { %p2807_p2 = pneg %p2806_p1 }
 0x4d8   : > { %2939 = dma.done.wait (%p2807_p2), %s2395_s12, 128  }
 0x4d9   : > { %2941 = vsyncadd (%p2807_p2), %s2395_s12, 4294967168  ;;  %s20_s29 = sadd.s32 1, %s2964_s29   ;;  %s3478_s24 = smov %s2948_s25 }
 0x4da   : > { %p17_p3 = scmp.ge.s32.totalorder %s20_s29, 4   ;;  %s3479_s25 = smov %s2952_s26 }
 0x4db   : > { %s3480_s26 = smov %s3064_s14  ;;  %s3481_s27 = smov %s2960_s28 }
 0x4dc   : > { %s3482_s28 = smov %s3484_s9  ;;  %19 = sbr.rel (!%p17_p3) target bundleno = 4 (0x4), region = 97 }
 0x4e1   :  { %2400 = vsyncpa [#allocation7], 1 }
 0x4e2   :  { %2402 = vsyncpa [#allocation7 + $0x1], 1 }

</bundles_post_ra>
